<compile_context>
chip_gen: v7x
topology: tpu7x:2x2x1
jax: 0.10.0
libtpu: 0.0.40
codegen_flags: <defaults>
</compile_context>

<pallas_src>
import jax
import jax.numpy as jnp
from jax.experimental import pallas as pl
from jax.experimental.pallas import tpu as pltpu

INPUT_SIZE = 64
HIDDEN_SIZE = 64
GATE_PAD = 128  # per-gate lane block (>= HIDDEN_SIZE, multiple of 128)

# torch gate row-group order is [i, f, g, o]; target padded block order is
# [i, f, o, g] so that one sigmoid covers blocks 0..2 and one tanh covers 3.
_TORCH_GROUP_TO_BLOCK = ((0, 0), (1, 1), (3, 2), (2, 3))


def _lstm_kernel(x_ref, h0_ref, c0_ref, w_ih_ref, w_hh_ref, b_ref,
                 y_ref, h_out_ref, c_out_ref, xproj_ref):
    H = HIDDEN_SIZE
    GP = GATE_PAD
    T, B, _ = y_ref.shape                                    # (T, B, H)

    # ---- one-shot input projection + fused bias (off the serial chain) -----
    # x_ref is (T*B, I) time-major; result rows t*B + b.
    xp = jnp.dot(x_ref[...], w_ih_ref[...],
                 preferred_element_type=jnp.float32) + b_ref[...]   # (T*B, 4GP)
    xproj_ref[...] = xp                                       # stage in VMEM

    w_hh = w_hh_ref[...]                                      # (H, 4GP)
    h = h0_ref[...]                                           # (B, H)
    c = c0_ref[...]                                           # (B, H)

    # ---- recurrence: fully unrolled; only h @ W_hh^T on the serial chain ---
    for t in range(T):                                        # static unroll
        x_t = xproj_ref[pl.ds(t * B, B), :]                   # (B, 4GP) chunk
        gates = x_t + jnp.dot(h, w_hh, preferred_element_type=jnp.float32)

        sig = jax.nn.sigmoid(gates[:, 0:3 * GP])              # one EUP launch: i,f,o
        g_g = jnp.tanh(gates[:, 3 * GP:3 * GP + H])           # one EUP launch: g
        i_g = sig[:, 0 * GP:0 * GP + H]                       # lane-offset-0 slices
        f_g = sig[:, 1 * GP:1 * GP + H]
        o_g = sig[:, 2 * GP:2 * GP + H]

        c = f_g * c + i_g * g_g
        h = o_g * jnp.tanh(c)
        y_ref[t] = h                                          # offset-0 store

    # ---- final states written once ------------------------------------------
    h_out_ref[...] = h
    c_out_ref[...] = c


def _pad_reorder_weight(w):
    """w: (4H, X) rows in torch gate order [i, f, g, o].
    Returns (X, 4*GATE_PAD): columns reordered to blocks [i, f, o, g], each
    gate's H real columns at lane offset 0 of its 128-lane block, rest zero."""
    H = HIDDEN_SIZE
    wt = jnp.transpose(w).astype(jnp.float32)                 # (X, 4H)
    out = jnp.zeros((wt.shape[0], 4 * GATE_PAD), jnp.float32)
    for src, blk in _TORCH_GROUP_TO_BLOCK:
        out = out.at[:, blk * GATE_PAD: blk * GATE_PAD + H].set(
            wt[:, src * H:(src + 1) * H])
    return out


def _pad_reorder_bias(b_ih, b_hh):
    H = HIDDEN_SIZE
    b = (b_ih + b_hh).astype(jnp.float32)                     # (4H,)
    out = jnp.zeros((1, 4 * GATE_PAD), jnp.float32)
    for src, blk in _TORCH_GROUP_TO_BLOCK:
        out = out.at[0, blk * GATE_PAD: blk * GATE_PAD + H].set(
            b[src * H:(src + 1) * H])
    return out


def lstm_forward_pallas(x_btd, h0_lbd, c0_lbd, w_ih, w_hh, b_ih, b_hh):
    """PyTorch-equivalent nn.LSTM forward (1 layer, batch_first=True).

    x_btd: (B, T, I)   h0_lbd/c0_lbd: (1, B, H)
    w_ih: (4H, I)      w_hh: (4H, H)   b_ih/b_hh: (4H,)
    returns (y (B, T, H), h (1, B, H), c (1, B, H))
    """
    B, T, I = x_btd.shape
    H = HIDDEN_SIZE

    # --- one-time parameter / input prep (tiny arrays, XLA side) ------------
    w_ih_p = _pad_reorder_weight(w_ih)                        # (I, 4*GATE_PAD)
    w_hh_p = _pad_reorder_weight(w_hh)                        # (H, 4*GATE_PAD)
    bias_p = _pad_reorder_bias(b_ih, b_hh)                    # (1, 4*GATE_PAD)
    x_tb = jnp.transpose(x_btd, (1, 0, 2)).reshape(T * B, I).astype(jnp.float32)
    h0 = h0_lbd[0].astype(jnp.float32)                        # (B, H)
    c0 = c0_lbd[0].astype(jnp.float32)                        # (B, H)

    vmem = pl.BlockSpec(memory_space=pltpu.MemorySpace.VMEM)
    y_tbh, h_T, c_T = pl.pallas_call(
        _lstm_kernel,
        out_shape=(
            jax.ShapeDtypeStruct((T, B, H), jnp.float32),     # y, time-major
            jax.ShapeDtypeStruct((B, H), jnp.float32),        # h_T
            jax.ShapeDtypeStruct((B, H), jnp.float32),        # c_T
        ),
        in_specs=[vmem, vmem, vmem, vmem, vmem, vmem],
        out_specs=(vmem, vmem, vmem),
        scratch_shapes=[pltpu.VMEM((T * B, 4 * GATE_PAD), jnp.float32)],
    )(x_tb, h0, c0, w_ih_p, w_hh_p, bias_p)

    y = jnp.transpose(y_tbh, (1, 0, 2))                       # (B, T, H), 4 KB
    return y, h_T[None], c_T[None]


def lstm_forward_ref(x_btd, h0_lbd, c0_lbd, w_ih, w_hh, b_ih, b_hh):
    """Pure-JAX reference matching torch.nn.LSTM semantics."""
    H = HIDDEN_SIZE
    x_tbd = jnp.transpose(x_btd, (1, 0, 2))
    h = h0_lbd[0]
    c = c0_lbd[0]

    def step(carry, x_t):
        h, c = carry
        gates = x_t @ w_ih.T + b_ih + h @ w_hh.T + b_hh
        i = jax.nn.sigmoid(gates[:, 0 * H:1 * H])
        f = jax.nn.sigmoid(gates[:, 1 * H:2 * H])
        g = jnp.tanh(gates[:, 2 * H:3 * H])
        o = jax.nn.sigmoid(gates[:, 3 * H:4 * H])
        c_new = f * c + i * g
        h_new = o * jnp.tanh(c_new)
        return (h_new, c_new), h_new

    (h_T, c_T), y_tbd = jax.lax.scan(step, (h, c), x_tbd)
    return jnp.transpose(y_tbd, (1, 0, 2)), h_T[None], c_T[None]


if __name__ == "__main__":
    B, T, I, H = 2, 8, INPUT_SIZE, HIDDEN_SIZE

    key = jax.random.PRNGKey(0)
    k_x, k_h, k_c, k_wih, k_whh, k_bih, k_bhh = jax.random.split(key, 7)

    # Deterministic synthetic parameters (same shapes nn.LSTM would create).
    scale = 1.0 / jnp.sqrt(H)
    w_ih = jax.random.uniform(k_wih, (4 * H, I), jnp.float32, -scale, scale)
    w_hh = jax.random.uniform(k_whh, (4 * H, H), jnp.float32, -scale, scale)
    b_ih = jax.random.uniform(k_bih, (4 * H,), jnp.float32, -scale, scale)
    b_hh = jax.random.uniform(k_bhh, (4 * H,), jnp.float32, -scale, scale)

    # Inputs: input (B, T, 64), h (1, B, 64), c (1, B, 64)
    x = jax.random.normal(k_x, (B, T, I), jnp.float32)
    h0 = jax.random.normal(k_h, (1, B, H), jnp.float32)
    c0 = jax.random.normal(k_c, (1, B, H), jnp.float32)

    y, h_n, c_n = lstm_forward_pallas(x, h0, c0, w_ih, w_hh, b_ih, b_hh)
    jax.block_until_ready((y, h_n, c_n))

    y_r, h_r, c_r = lstm_forward_ref(x, h0, c0, w_ih, w_hh, b_ih, b_hh)
    assert y.shape == (B, T, H) and h_n.shape == (1, B, H) and c_n.shape == (1, B, H)
    assert jnp.allclose(y, y_r, atol=1e-5, rtol=1e-5)
    assert jnp.allclose(h_n, h_r, atol=1e-5, rtol=1e-5)
    assert jnp.allclose(c_n, c_r, atol=1e-5, rtol=1e-5)

    print("KERNEL_OK")
</pallas_src>

<mosaic_0001>
module attributes {stable_mosaic.version = 11 : i64} {
  func.func @_lstm_kernel(%arg0: memref<16x64xf32, #tpu.memory_space<vmem>>, %arg1: memref<2x64xf32, #tpu.memory_space<vmem>>, %arg2: memref<2x64xf32, #tpu.memory_space<vmem>>, %arg3: memref<64x512xf32, #tpu.memory_space<vmem>>, %arg4: memref<64x512xf32, #tpu.memory_space<vmem>>, %arg5: memref<1x512xf32, #tpu.memory_space<vmem>>, %arg6: memref<8x2x64xf32, #tpu.memory_space<vmem>>, %arg7: memref<2x64xf32, #tpu.memory_space<vmem>>, %arg8: memref<2x64xf32, #tpu.memory_space<vmem>>, %arg9: memref<16x512xf32, #tpu.memory_space<vmem>>) attributes {dimension_semantics = [], scalar_prefetch = 0 : i64, scratch_operands = 1 : i64, tpu.core_type = #tpu.core_type<tc>} {
    %c0 = arith.constant 0 : index
    %c0_0 = arith.constant 0 : index
    %0 = vector.load %arg0[%c0, %c0_0] : memref<16x64xf32, #tpu.memory_space<vmem>>, vector<16x64xf32>
    %c0_1 = arith.constant 0 : index
    %c0_2 = arith.constant 0 : index
    %1 = vector.load %arg3[%c0_1, %c0_2] : memref<64x512xf32, #tpu.memory_space<vmem>>, vector<64x512xf32>
    %cst = arith.constant dense<0.000000e+00> : vector<16x512xf32>
    %2 = tpu.matmul %0, %1, %cst {dimension_numbers = #tpu.dot_dimension_numbers<[1], [0], [0], [1], [0, 0, 1, 1], [], []>} : vector<16x64xf32>, vector<64x512xf32>, vector<16x512xf32> -> vector<16x512xf32>
    %c0_3 = arith.constant 0 : index
    %c0_4 = arith.constant 0 : index
    %3 = vector.load %arg5[%c0_3, %c0_4] : memref<1x512xf32, #tpu.memory_space<vmem>>, vector<1x512xf32>
    %4 = vector.broadcast %3 : vector<1x512xf32> to vector<16x512xf32>
    %5 = arith.addf %2, %4 : vector<16x512xf32>
    %c0_5 = arith.constant 0 : index
    %c0_6 = arith.constant 0 : index
    %6 = vector.load %arg9[%c0_5, %c0_6] : memref<16x512xf32, #tpu.memory_space<vmem>>, vector<16x512xf32>
    tpu.vector_store %arg9[%c0_5, %c0_6], %5 {strides = array<i32>} : memref<16x512xf32, #tpu.memory_space<vmem>>, vector<16x512xf32>,
    %c0_7 = arith.constant 0 : index
    %c0_8 = arith.constant 0 : index
    %7 = vector.load %arg4[%c0_7, %c0_8] : memref<64x512xf32, #tpu.memory_space<vmem>>, vector<64x512xf32>
    %c0_9 = arith.constant 0 : index
    %c0_10 = arith.constant 0 : index
    %8 = vector.load %arg1[%c0_9, %c0_10] : memref<2x64xf32, #tpu.memory_space<vmem>>, vector<2x64xf32>
    %c0_11 = arith.constant 0 : index
    %c0_12 = arith.constant 0 : index
    %9 = vector.load %arg2[%c0_11, %c0_12] : memref<2x64xf32, #tpu.memory_space<vmem>>, vector<2x64xf32>
    %c0_13 = arith.constant 0 : index
    %c0_14 = arith.constant 0 : index
    %10 = vector.load %arg9[%c0_13, %c0_14] : memref<16x512xf32, #tpu.memory_space<vmem>>, vector<2x512xf32>
    %cst_15 = arith.constant dense<0.000000e+00> : vector<2x512xf32>
    %11 = tpu.matmul %8, %7, %cst_15 {dimension_numbers = #tpu.dot_dimension_numbers<[1], [0], [0], [1], [0, 0, 1, 1], [], []>} : vector<2x64xf32>, vector<64x512xf32>, vector<2x512xf32> -> vector<2x512xf32>
    %12 = arith.addf %10, %11 : vector<2x512xf32>
    %13 = vector.extract_strided_slice %12 {offsets = [0, 0], sizes = [2, 384], strides = [1, 1]} : vector<2x512xf32> to vector<2x384xf32>
    %14 = arith.negf %13 : vector<2x384xf32>
    %15 = math.exp %14 : vector<2x384xf32>
    %cst_16 = arith.constant 1.000000e+00 : f32
    %16 = vector.broadcast %cst_16 : f32 to vector<2x384xf32>
    %17 = arith.addf %16, %15 : vector<2x384xf32>
    %18 = arith.divf %16, %17 : vector<2x384xf32>
    %19 = vector.extract_strided_slice %12 {offsets = [0, 384], sizes = [2, 64], strides = [1, 1]} : vector<2x512xf32> to vector<2x64xf32>
    %20 = math.tanh %19 : vector<2x64xf32>
    %21 = vector.extract_strided_slice %18 {offsets = [0, 0], sizes = [2, 64], strides = [1, 1]} : vector<2x384xf32> to vector<2x64xf32>
    %22 = vector.extract_strided_slice %18 {offsets = [0, 128], sizes = [2, 64], strides = [1, 1]} : vector<2x384xf32> to vector<2x64xf32>
    %23 = vector.extract_strided_slice %18 {offsets = [0, 256], sizes = [2, 64], strides = [1, 1]} : vector<2x384xf32> to vector<2x64xf32>
    %24 = arith.mulf %22, %9 : vector<2x64xf32>
    %25 = arith.mulf %21, %20 : vector<2x64xf32>
    %26 = arith.addf %24, %25 : vector<2x64xf32>
    %27 = math.tanh %26 : vector<2x64xf32>
    %28 = arith.mulf %23, %27 : vector<2x64xf32>
    %c0_17 = arith.constant 0 : index
    %c0_18 = arith.constant 0 : index
    %c0_19 = arith.constant 0 : index
    %29 = vector.load %arg6[%c0_17, %c0_18, %c0_19] : memref<8x2x64xf32, #tpu.memory_space<vmem>>, vector<1x2x64xf32>
    %30 = vector.shape_cast %29 : vector<1x2x64xf32> to vector<2x64xf32>
    %31 = vector.shape_cast %28 : vector<2x64xf32> to vector<1x2x64xf32>
    tpu.vector_store %arg6[%c0_17, %c0_18, %c0_19], %31 {strides = array<i32>} : memref<8x2x64xf32, #tpu.memory_space<vmem>>, vector<1x2x64xf32>,
    %c2 = arith.constant 2 : index
    %c0_20 = arith.constant 0 : index
    %32 = vector.load %arg9[%c2, %c0_20] : memref<16x512xf32, #tpu.memory_space<vmem>>, vector<2x512xf32>
    %cst_21 = arith.constant dense<0.000000e+00> : vector<2x512xf32>
    %33 = tpu.matmul %28, %7, %cst_21 {dimension_numbers = #tpu.dot_dimension_numbers<[1], [0], [0], [1], [0, 0, 1, 1], [], []>} : vector<2x64xf32>, vector<64x512xf32>, vector<2x512xf32> -> vector<2x512xf32>
    %34 = arith.addf %32, %33 : vector<2x512xf32>
    %35 = vector.extract_strided_slice %34 {offsets = [0, 0], sizes = [2, 384], strides = [1, 1]} : vector<2x512xf32> to vector<2x384xf32>
    %36 = arith.negf %35 : vector<2x384xf32>
    %37 = math.exp %36 : vector<2x384xf32>
    %cst_22 = arith.constant 1.000000e+00 : f32
    %38 = vector.broadcast %cst_22 : f32 to vector<2x384xf32>
    %39 = arith.addf %38, %37 : vector<2x384xf32>
    %40 = arith.divf %38, %39 : vector<2x384xf32>
    %41 = vector.extract_strided_slice %34 {offsets = [0, 384], sizes = [2, 64], strides = [1, 1]} : vector<2x512xf32> to vector<2x64xf32>
    %42 = math.tanh %41 : vector<2x64xf32>
    %43 = vector.extract_strided_slice %40 {offsets = [0, 0], sizes = [2, 64], strides = [1, 1]} : vector<2x384xf32> to vector<2x64xf32>
    %44 = vector.extract_strided_slice %40 {offsets = [0, 128], sizes = [2, 64], strides = [1, 1]} : vector<2x384xf32> to vector<2x64xf32>
    %45 = vector.extract_strided_slice %40 {offsets = [0, 256], sizes = [2, 64], strides = [1, 1]} : vector<2x384xf32> to vector<2x64xf32>
    %46 = arith.mulf %44, %26 : vector<2x64xf32>
    %47 = arith.mulf %43, %42 : vector<2x64xf32>
    %48 = arith.addf %46, %47 : vector<2x64xf32>
    %49 = math.tanh %48 : vector<2x64xf32>
    %50 = arith.mulf %45, %49 : vector<2x64xf32>
    %c1 = arith.constant 1 : index
    %c0_23 = arith.constant 0 : index
    %c0_24 = arith.constant 0 : index
    %51 = vector.load %arg6[%c1, %c0_23, %c0_24] : memref<8x2x64xf32, #tpu.memory_space<vmem>>, vector<1x2x64xf32>
    %52 = vector.shape_cast %51 : vector<1x2x64xf32> to vector<2x64xf32>
    %53 = vector.shape_cast %50 : vector<2x64xf32> to vector<1x2x64xf32>
    tpu.vector_store %arg6[%c1, %c0_23, %c0_24], %53 {strides = array<i32>} : memref<8x2x64xf32, #tpu.memory_space<vmem>>, vector<1x2x64xf32>,
    %c4 = arith.constant 4 : index
    %c0_25 = arith.constant 0 : index
    %54 = vector.load %arg9[%c4, %c0_25] : memref<16x512xf32, #tpu.memory_space<vmem>>, vector<2x512xf32>
    %cst_26 = arith.constant dense<0.000000e+00> : vector<2x512xf32>
    %55 = tpu.matmul %50, %7, %cst_26 {dimension_numbers = #tpu.dot_dimension_numbers<[1], [0], [0], [1], [0, 0, 1, 1], [], []>} : vector<2x64xf32>, vector<64x512xf32>, vector<2x512xf32> -> vector<2x512xf32>
    %56 = arith.addf %54, %55 : vector<2x512xf32>
    %57 = vector.extract_strided_slice %56 {offsets = [0, 0], sizes = [2, 384], strides = [1, 1]} : vector<2x512xf32> to vector<2x384xf32>
    %58 = arith.negf %57 : vector<2x384xf32>
    %59 = math.exp %58 : vector<2x384xf32>
    %cst_27 = arith.constant 1.000000e+00 : f32
    %60 = vector.broadcast %cst_27 : f32 to vector<2x384xf32>
    %61 = arith.addf %60, %59 : vector<2x384xf32>
    %62 = arith.divf %60, %61 : vector<2x384xf32>
    %63 = vector.extract_strided_slice %56 {offsets = [0, 384], sizes = [2, 64], strides = [1, 1]} : vector<2x512xf32> to vector<2x64xf32>
    %64 = math.tanh %63 : vector<2x64xf32>
    %65 = vector.extract_strided_slice %62 {offsets = [0, 0], sizes = [2, 64], strides = [1, 1]} : vector<2x384xf32> to vector<2x64xf32>
    %66 = vector.extract_strided_slice %62 {offsets = [0, 128], sizes = [2, 64], strides = [1, 1]} : vector<2x384xf32> to vector<2x64xf32>
    %67 = vector.extract_strided_slice %62 {offsets = [0, 256], sizes = [2, 64], strides = [1, 1]} : vector<2x384xf32> to vector<2x64xf32>
    %68 = arith.mulf %66, %48 : vector<2x64xf32>
    %69 = arith.mulf %65, %64 : vector<2x64xf32>
    %70 = arith.addf %68, %69 : vector<2x64xf32>
    %71 = math.tanh %70 : vector<2x64xf32>
    %72 = arith.mulf %67, %71 : vector<2x64xf32>
    %c2_28 = arith.constant 2 : index
    %c0_29 = arith.constant 0 : index
    %c0_30 = arith.constant 0 : index
    %73 = vector.load %arg6[%c2_28, %c0_29, %c0_30] : memref<8x2x64xf32, #tpu.memory_space<vmem>>, vector<1x2x64xf32>
    %74 = vector.shape_cast %73 : vector<1x2x64xf32> to vector<2x64xf32>
    %75 = vector.shape_cast %72 : vector<2x64xf32> to vector<1x2x64xf32>
    tpu.vector_store %arg6[%c2_28, %c0_29, %c0_30], %75 {strides = array<i32>} : memref<8x2x64xf32, #tpu.memory_space<vmem>>, vector<1x2x64xf32>,
    %c6 = arith.constant 6 : index
    %c0_31 = arith.constant 0 : index
    %76 = vector.load %arg9[%c6, %c0_31] : memref<16x512xf32, #tpu.memory_space<vmem>>, vector<2x512xf32>
    %cst_32 = arith.constant dense<0.000000e+00> : vector<2x512xf32>
    %77 = tpu.matmul %72, %7, %cst_32 {dimension_numbers = #tpu.dot_dimension_numbers<[1], [0], [0], [1], [0, 0, 1, 1], [], []>} : vector<2x64xf32>, vector<64x512xf32>, vector<2x512xf32> -> vector<2x512xf32>
    %78 = arith.addf %76, %77 : vector<2x512xf32>
    %79 = vector.extract_strided_slice %78 {offsets = [0, 0], sizes = [2, 384], strides = [1, 1]} : vector<2x512xf32> to vector<2x384xf32>
    %80 = arith.negf %79 : vector<2x384xf32>
    %81 = math.exp %80 : vector<2x384xf32>
    %cst_33 = arith.constant 1.000000e+00 : f32
    %82 = vector.broadcast %cst_33 : f32 to vector<2x384xf32>
    %83 = arith.addf %82, %81 : vector<2x384xf32>
    %84 = arith.divf %82, %83 : vector<2x384xf32>
    %85 = vector.extract_strided_slice %78 {offsets = [0, 384], sizes = [2, 64], strides = [1, 1]} : vector<2x512xf32> to vector<2x64xf32>
    %86 = math.tanh %85 : vector<2x64xf32>
    %87 = vector.extract_strided_slice %84 {offsets = [0, 0], sizes = [2, 64], strides = [1, 1]} : vector<2x384xf32> to vector<2x64xf32>
    %88 = vector.extract_strided_slice %84 {offsets = [0, 128], sizes = [2, 64], strides = [1, 1]} : vector<2x384xf32> to vector<2x64xf32>
    %89 = vector.extract_strided_slice %84 {offsets = [0, 256], sizes = [2, 64], strides = [1, 1]} : vector<2x384xf32> to vector<2x64xf32>
    %90 = arith.mulf %88, %70 : vector<2x64xf32>
    %91 = arith.mulf %87, %86 : vector<2x64xf32>
    %92 = arith.addf %90, %91 : vector<2x64xf32>
    %93 = math.tanh %92 : vector<2x64xf32>
    %94 = arith.mulf %89, %93 : vector<2x64xf32>
    %c3 = arith.constant 3 : index
    %c0_34 = arith.constant 0 : index
    %c0_35 = arith.constant 0 : index
    %95 = vector.load %arg6[%c3, %c0_34, %c0_35] : memref<8x2x64xf32, #tpu.memory_space<vmem>>, vector<1x2x64xf32>
    %96 = vector.shape_cast %95 : vector<1x2x64xf32> to vector<2x64xf32>
    %97 = vector.shape_cast %94 : vector<2x64xf32> to vector<1x2x64xf32>
    tpu.vector_store %arg6[%c3, %c0_34, %c0_35], %97 {strides = array<i32>} : memref<8x2x64xf32, #tpu.memory_space<vmem>>, vector<1x2x64xf32>,
    %c8 = arith.constant 8 : index
    %c0_36 = arith.constant 0 : index
    %98 = vector.load %arg9[%c8, %c0_36] : memref<16x512xf32, #tpu.memory_space<vmem>>, vector<2x512xf32>
    %cst_37 = arith.constant dense<0.000000e+00> : vector<2x512xf32>
    %99 = tpu.matmul %94, %7, %cst_37 {dimension_numbers = #tpu.dot_dimension_numbers<[1], [0], [0], [1], [0, 0, 1, 1], [], []>} : vector<2x64xf32>, vector<64x512xf32>, vector<2x512xf32> -> vector<2x512xf32>
    %100 = arith.addf %98, %99 : vector<2x512xf32>
    %101 = vector.extract_strided_slice %100 {offsets = [0, 0], sizes = [2, 384], strides = [1, 1]} : vector<2x512xf32> to vector<2x384xf32>
    %102 = arith.negf %101 : vector<2x384xf32>
    %103 = math.exp %102 : vector<2x384xf32>
    %cst_38 = arith.constant 1.000000e+00 : f32
    %104 = vector.broadcast %cst_38 : f32 to vector<2x384xf32>
    %105 = arith.addf %104, %103 : vector<2x384xf32>
    %106 = arith.divf %104, %105 : vector<2x384xf32>
    %107 = vector.extract_strided_slice %100 {offsets = [0, 384], sizes = [2, 64], strides = [1, 1]} : vector<2x512xf32> to vector<2x64xf32>
    %108 = math.tanh %107 : vector<2x64xf32>
    %109 = vector.extract_strided_slice %106 {offsets = [0, 0], sizes = [2, 64], strides = [1, 1]} : vector<2x384xf32> to vector<2x64xf32>
    %110 = vector.extract_strided_slice %106 {offsets = [0, 128], sizes = [2, 64], strides = [1, 1]} : vector<2x384xf32> to vector<2x64xf32>
    %111 = vector.extract_strided_slice %106 {offsets = [0, 256], sizes = [2, 64], strides = [1, 1]} : vector<2x384xf32> to vector<2x64xf32>
    %112 = arith.mulf %110, %92 : vector<2x64xf32>
    %113 = arith.mulf %109, %108 : vector<2x64xf32>
    %114 = arith.addf %112, %113 : vector<2x64xf32>
    %115 = math.tanh %114 : vector<2x64xf32>
    %116 = arith.mulf %111, %115 : vector<2x64xf32>
    %c4_39 = arith.constant 4 : index
    %c0_40 = arith.constant 0 : index
    %c0_41 = arith.constant 0 : index
    %117 = vector.load %arg6[%c4_39, %c0_40, %c0_41] : memref<8x2x64xf32, #tpu.memory_space<vmem>>, vector<1x2x64xf32>
    %118 = vector.shape_cast %117 : vector<1x2x64xf32> to vector<2x64xf32>
    %119 = vector.shape_cast %116 : vector<2x64xf32> to vector<1x2x64xf32>
    tpu.vector_store %arg6[%c4_39, %c0_40, %c0_41], %119 {strides = array<i32>} : memref<8x2x64xf32, #tpu.memory_space<vmem>>, vector<1x2x64xf32>,
    %c10 = arith.constant 10 : index
    %c0_42 = arith.constant 0 : index
    %120 = vector.load %arg9[%c10, %c0_42] : memref<16x512xf32, #tpu.memory_space<vmem>>, vector<2x512xf32>
    %cst_43 = arith.constant dense<0.000000e+00> : vector<2x512xf32>
    %121 = tpu.matmul %116, %7, %cst_43 {dimension_numbers = #tpu.dot_dimension_numbers<[1], [0], [0], [1], [0, 0, 1, 1], [], []>} : vector<2x64xf32>, vector<64x512xf32>, vector<2x512xf32> -> vector<2x512xf32>
    %122 = arith.addf %120, %121 : vector<2x512xf32>
    %123 = vector.extract_strided_slice %122 {offsets = [0, 0], sizes = [2, 384], strides = [1, 1]} : vector<2x512xf32> to vector<2x384xf32>
    %124 = arith.negf %123 : vector<2x384xf32>
    %125 = math.exp %124 : vector<2x384xf32>
    %cst_44 = arith.constant 1.000000e+00 : f32
    %126 = vector.broadcast %cst_44 : f32 to vector<2x384xf32>
    %127 = arith.addf %126, %125 : vector<2x384xf32>
    %128 = arith.divf %126, %127 : vector<2x384xf32>
    %129 = vector.extract_strided_slice %122 {offsets = [0, 384], sizes = [2, 64], strides = [1, 1]} : vector<2x512xf32> to vector<2x64xf32>
    %130 = math.tanh %129 : vector<2x64xf32>
    %131 = vector.extract_strided_slice %128 {offsets = [0, 0], sizes = [2, 64], strides = [1, 1]} : vector<2x384xf32> to vector<2x64xf32>
    %132 = vector.extract_strided_slice %128 {offsets = [0, 128], sizes = [2, 64], strides = [1, 1]} : vector<2x384xf32> to vector<2x64xf32>
    %133 = vector.extract_strided_slice %128 {offsets = [0, 256], sizes = [2, 64], strides = [1, 1]} : vector<2x384xf32> to vector<2x64xf32>
    %134 = arith.mulf %132, %114 : vector<2x64xf32>
    %135 = arith.mulf %131, %130 : vector<2x64xf32>
    %136 = arith.addf %134, %135 : vector<2x64xf32>
    %137 = math.tanh %136 : vector<2x64xf32>
    %138 = arith.mulf %133, %137 : vector<2x64xf32>
    %c5 = arith.constant 5 : index
    %c0_45 = arith.constant 0 : index
    %c0_46 = arith.constant 0 : index
    %139 = vector.load %arg6[%c5, %c0_45, %c0_46] : memref<8x2x64xf32, #tpu.memory_space<vmem>>, vector<1x2x64xf32>
    %140 = vector.shape_cast %139 : vector<1x2x64xf32> to vector<2x64xf32>
    %141 = vector.shape_cast %138 : vector<2x64xf32> to vector<1x2x64xf32>
    tpu.vector_store %arg6[%c5, %c0_45, %c0_46], %141 {strides = array<i32>} : memref<8x2x64xf32, #tpu.memory_space<vmem>>, vector<1x2x64xf32>,
    %c12 = arith.constant 12 : index
    %c0_47 = arith.constant 0 : index
    %142 = vector.load %arg9[%c12, %c0_47] : memref<16x512xf32, #tpu.memory_space<vmem>>, vector<2x512xf32>
    %cst_48 = arith.constant dense<0.000000e+00> : vector<2x512xf32>
    %143 = tpu.matmul %138, %7, %cst_48 {dimension_numbers = #tpu.dot_dimension_numbers<[1], [0], [0], [1], [0, 0, 1, 1], [], []>} : vector<2x64xf32>, vector<64x512xf32>, vector<2x512xf32> -> vector<2x512xf32>
    %144 = arith.addf %142, %143 : vector<2x512xf32>
    %145 = vector.extract_strided_slice %144 {offsets = [0, 0], sizes = [2, 384], strides = [1, 1]} : vector<2x512xf32> to vector<2x384xf32>
    %146 = arith.negf %145 : vector<2x384xf32>
    %147 = math.exp %146 : vector<2x384xf32>
    %cst_49 = arith.constant 1.000000e+00 : f32
    %148 = vector.broadcast %cst_49 : f32 to vector<2x384xf32>
    %149 = arith.addf %148, %147 : vector<2x384xf32>
    %150 = arith.divf %148, %149 : vector<2x384xf32>
    %151 = vector.extract_strided_slice %144 {offsets = [0, 384], sizes = [2, 64], strides = [1, 1]} : vector<2x512xf32> to vector<2x64xf32>
    %152 = math.tanh %151 : vector<2x64xf32>
    %153 = vector.extract_strided_slice %150 {offsets = [0, 0], sizes = [2, 64], strides = [1, 1]} : vector<2x384xf32> to vector<2x64xf32>
    %154 = vector.extract_strided_slice %150 {offsets = [0, 128], sizes = [2, 64], strides = [1, 1]} : vector<2x384xf32> to vector<2x64xf32>
    %155 = vector.extract_strided_slice %150 {offsets = [0, 256], sizes = [2, 64], strides = [1, 1]} : vector<2x384xf32> to vector<2x64xf32>
    %156 = arith.mulf %154, %136 : vector<2x64xf32>
    %157 = arith.mulf %153, %152 : vector<2x64xf32>
    %158 = arith.addf %156, %157 : vector<2x64xf32>
    %159 = math.tanh %158 : vector<2x64xf32>
    %160 = arith.mulf %155, %159 : vector<2x64xf32>
    %c6_50 = arith.constant 6 : index
    %c0_51 = arith.constant 0 : index
    %c0_52 = arith.constant 0 : index
    %161 = vector.load %arg6[%c6_50, %c0_51, %c0_52] : memref<8x2x64xf32, #tpu.memory_space<vmem>>, vector<1x2x64xf32>
    %162 = vector.shape_cast %161 : vector<1x2x64xf32> to vector<2x64xf32>
    %163 = vector.shape_cast %160 : vector<2x64xf32> to vector<1x2x64xf32>
    tpu.vector_store %arg6[%c6_50, %c0_51, %c0_52], %163 {strides = array<i32>} : memref<8x2x64xf32, #tpu.memory_space<vmem>>, vector<1x2x64xf32>,
    %c14 = arith.constant 14 : index
    %c0_53 = arith.constant 0 : index
    %164 = vector.load %arg9[%c14, %c0_53] : memref<16x512xf32, #tpu.memory_space<vmem>>, vector<2x512xf32>
    %cst_54 = arith.constant dense<0.000000e+00> : vector<2x512xf32>
    %165 = tpu.matmul %160, %7, %cst_54 {dimension_numbers = #tpu.dot_dimension_numbers<[1], [0], [0], [1], [0, 0, 1, 1], [], []>} : vector<2x64xf32>, vector<64x512xf32>, vector<2x512xf32> -> vector<2x512xf32>
    %166 = arith.addf %164, %165 : vector<2x512xf32>
    %167 = vector.extract_strided_slice %166 {offsets = [0, 0], sizes = [2, 384], strides = [1, 1]} : vector<2x512xf32> to vector<2x384xf32>
    %168 = arith.negf %167 : vector<2x384xf32>
    %169 = math.exp %168 : vector<2x384xf32>
    %cst_55 = arith.constant 1.000000e+00 : f32
    %170 = vector.broadcast %cst_55 : f32 to vector<2x384xf32>
    %171 = arith.addf %170, %169 : vector<2x384xf32>
    %172 = arith.divf %170, %171 : vector<2x384xf32>
    %173 = vector.extract_strided_slice %166 {offsets = [0, 384], sizes = [2, 64], strides = [1, 1]} : vector<2x512xf32> to vector<2x64xf32>
    %174 = math.tanh %173 : vector<2x64xf32>
    %175 = vector.extract_strided_slice %172 {offsets = [0, 0], sizes = [2, 64], strides = [1, 1]} : vector<2x384xf32> to vector<2x64xf32>
    %176 = vector.extract_strided_slice %172 {offsets = [0, 128], sizes = [2, 64], strides = [1, 1]} : vector<2x384xf32> to vector<2x64xf32>
    %177 = vector.extract_strided_slice %172 {offsets = [0, 256], sizes = [2, 64], strides = [1, 1]} : vector<2x384xf32> to vector<2x64xf32>
    %178 = arith.mulf %176, %158 : vector<2x64xf32>
    %179 = arith.mulf %175, %174 : vector<2x64xf32>
    %180 = arith.addf %178, %179 : vector<2x64xf32>
    %181 = math.tanh %180 : vector<2x64xf32>
    %182 = arith.mulf %177, %181 : vector<2x64xf32>
    %c7 = arith.constant 7 : index
    %c0_56 = arith.constant 0 : index
    %c0_57 = arith.constant 0 : index
    %183 = vector.load %arg6[%c7, %c0_56, %c0_57] : memref<8x2x64xf32, #tpu.memory_space<vmem>>, vector<1x2x64xf32>
    %184 = vector.shape_cast %183 : vector<1x2x64xf32> to vector<2x64xf32>
    %185 = vector.shape_cast %182 : vector<2x64xf32> to vector<1x2x64xf32>
    tpu.vector_store %arg6[%c7, %c0_56, %c0_57], %185 {strides = array<i32>} : memref<8x2x64xf32, #tpu.memory_space<vmem>>, vector<1x2x64xf32>,
    %c0_58 = arith.constant 0 : index
    %c0_59 = arith.constant 0 : index
    %186 = vector.load %arg7[%c0_58, %c0_59] : memref<2x64xf32, #tpu.memory_space<vmem>>, vector<2x64xf32>
    tpu.vector_store %arg7[%c0_58, %c0_59], %182 {strides = array<i32>} : memref<2x64xf32, #tpu.memory_space<vmem>>, vector<2x64xf32>,
    %c0_60 = arith.constant 0 : index
    %c0_61 = arith.constant 0 : index
    %187 = vector.load %arg8[%c0_60, %c0_61] : memref<2x64xf32, #tpu.memory_space<vmem>>, vector<2x64xf32>
    tpu.vector_store %arg8[%c0_60, %c0_61], %180 {strides = array<i32>} : memref<2x64xf32, #tpu.memory_space<vmem>>, vector<2x64xf32>,
    return
  }
}

</mosaic_0001>

<bundles_post_ra>
// kernel: tpu_custom_call.1
= control target key start
LH: loop header
LB: loop body
LE: loop exit
PB: predicated region body
PF: predicated region fallthrough
CT: control target
= control target key end

     0   :  { %14 = vsyncpa [#allocation4], 0  ;;  %s2961_s0 = inlined_call_operand.hbm [shape: f32[16,64], index: 0, kind: input, shape index: {}]   ;;  %s2962_s1 = inlined_call_operand.vmem [shape: f32[2,64], index: 1, kind: input, shape index: {}]   ;;  %s2963_s2 = inlined_call_operand.hbm [shape: f32[2,64], index: 2, kind: input, shape index: {}]   ;;  %s2964_s3 = inlined_call_operand.hbm [shape: f32[64,512], index: 3, kind: input, shape index: {}]   ;;  %s2965_s4 = inlined_call_operand.hbm [shape: f32[64,512], index: 4, kind: input, shape index: {}]   ;;  %s2966_s5 = inlined_call_operand.vmem [shape: f32[1,512], index: 5, kind: input, shape index: {}]   ;;  %s2967_s6 = inlined_call_operand.hbm [shape: f32[8,2,64], index: 6, kind: output, shape index: {0}]   ;;  %s2968_s7 = inlined_call_operand.hbm [shape: f32[2,64], index: 7, kind: output, shape index: {1}]   ;;  %s2969_s8 = inlined_call_operand.hbm [shape: f32[2,64], index: 8, kind: output, shape index: {2}]  }
   0x1   :  { %15 = vsyncpa [#allocation7], 0 }
   0x2   :  { %16 = vsyncpa [#allocation10], 0 }
   0x3   :  { %17 = vsyncpa [#allocation5], 0 }
   0x4   :  { %18 = vsyncpa [#allocation13], 0  ;;  %s2558_s27 = smov [#allocation6]   ;;  %s2559_s29 = smov [#allocation3]  }
   0x5   :  { %s39_s28 = sshll.u32 %s2558_s27, 4  ;;  %s24_s30 = sshll.u32 %s2559_s29, 4  ;;  %s40_s28 = int_to_ptr.vmem [resolvable:$true] %s39_s28  ;;  %s2616_s30 = int_to_ptr.vmem [resolvable:$true] %s24_s30 }
   0x6   :  { %s2394_s11 = scalar_lea.hbm %s2963_s2, 32 }
   0x7   :  { %p2395_p0 = scmp.ne.s32.totalorder %s2963_s2, %s2394_s11  ;;  %p2398_p1 = scmp.lt.u32.totalorder %s2394_s11, %s2963_s2 }
   0x9   :  { %p2400_p2 = pnand %p2398_p1, %p2395_p0 }
   0xb   :  { %2403 = shalt.err (!%p2400_p2)
}
   0xc   :  { %s2404_s16 = scalar_lea.vmem %s40_s28, 32  ;;  %p2409_p4 = scmp.lt.s32.totalorder %s40_s28, %s40_s28 }
   0xd   :  { %p2405_p3 = scmp.ne.s32.totalorder %s40_s28, %s2404_s16  ;;  %p2410_p5 = scmp.lt.s32.totalorder %s2404_s16, %s2404_s16 }
   0xf   :  { %p2411_p6 = por %p2410_p5, %p2409_p4 }
  0x11   :  { %p2412_p7 = pnand %p2411_p6, %p2405_p3 }
  0x13   :  { %2415 = shalt.err (!%p2412_p7)
}
  0x14   :  { %42 = dma.hbm_to_vmem [thread:$0]  %s2963_s2, 32, %s40_s28, [#allocation7]  }
  0x15   :  { %s2416_s21 = scalar_lea.hbm %s2961_s0, 256 }
  0x16   :  { %p2417_p8 = scmp.ne.s32.totalorder %s2961_s0, %s2416_s21  ;;  %p2420_p9 = scmp.lt.u32.totalorder %s2416_s21, %s2961_s0 }
  0x18   :  { %p2422_p10 = pnand %p2420_p9, %p2417_p8 }
  0x1a   :  { %2425 = shalt.err (!%p2422_p10)
}
  0x1b   :  { %s2426_s26 = scalar_lea.vmem %s2616_s30, 256  ;;  %p2431_p12 = scmp.lt.s32.totalorder %s2616_s30, %s2616_s30 }
  0x1c   :  { %p2427_p11 = scmp.ne.s32.totalorder %s2616_s30, %s2426_s26  ;;  %p2432_p13 = scmp.lt.s32.totalorder %s2426_s26, %s2426_s26 }
  0x1e   :  { %p2433_p0 = por %p2432_p13, %p2431_p12 }
  0x20   :  { %p2434_p1 = pnand %p2433_p0, %p2427_p11 }
  0x22   :  { %2437 = shalt.err (!%p2434_p1)
}
  0x23   :  { %s2560_s2 = smov 128   ;;  %s2561_s27 = smov 8  }
  0x24   :  { %30 = dma.hbm_to_vmem [thread:$0]  %s2961_s0, 256, %s2616_s30, [#allocation4], %s2560_s2, %s2560_s2, %s2561_s27  }
  0x25   :  { %s2562_s9 = smov [#allocation8]   ;;  %s2438_s13 = scalar_lea.hbm %s2964_s3, 4096 }
  0x26   :  { %s48_s10 = sshll.u32 %s2562_s9, 4  ;;  %p2439_p2 = scmp.ne.s32.totalorder %s2964_s3, %s2438_s13  ;;  %s49_s10 = int_to_ptr.vmem [resolvable:$true] %s48_s10 }
  0x27   :  { %p2442_p3 = scmp.lt.u32.totalorder %s2438_s13, %s2964_s3 }
  0x29   :  { %p2444_p4 = pnand %p2442_p3, %p2439_p2 }
  0x2b   :  { %2447 = shalt.err (!%p2444_p4)
}
  0x2c   :  { %s2448_s18 = scalar_lea.vmem %s49_s10, 4096  ;;  %p2453_p6 = scmp.lt.s32.totalorder %s49_s10, %s49_s10 }
  0x2d   :  { %p2449_p5 = scmp.ne.s32.totalorder %s49_s10, %s2448_s18  ;;  %p2454_p7 = scmp.lt.s32.totalorder %s2448_s18, %s2448_s18 }
  0x2f   :  { %p2455_p8 = por %p2454_p7, %p2453_p6 }
  0x31   :  { %p2456_p9 = pnand %p2455_p8, %p2449_p5 }
  0x33   :  { %2459 = shalt.err (!%p2456_p9)
}
  0x34   :  { %s2563_s0 = smov 512   ;;  %s2564_s30 = smov 32  }
  0x35   :  { %54 = dma.hbm_to_vmem [thread:$0]  %s2964_s3, 4096, %s49_s10, [#allocation7], %s2563_s0, %s2563_s0, %s2564_s30  }
  0x36   :  { %s2565_s21 = smov [#allocation9]   ;;  %s2460_s25 = scalar_lea.hbm %s2965_s4, 4096 }
  0x37   :  { %s60_s22 = sshll.u32 %s2565_s21, 4  ;;  %p2461_p10 = scmp.ne.s32.totalorder %s2965_s4, %s2460_s25  ;;  %s61_s22 = int_to_ptr.vmem [resolvable:$true] %s60_s22 }
  0x38   :  { %p2464_p11 = scmp.lt.u32.totalorder %s2460_s25, %s2965_s4 }
  0x3a   :  { %p2466_p12 = pnand %p2464_p11, %p2461_p10 }
  0x3c   :  { %2469 = shalt.err (!%p2466_p12)
}
  0x3d   :  { %s2470_s29 = scalar_lea.vmem %s61_s22, 4096  ;;  %p2475_p0 = scmp.lt.s32.totalorder %s61_s22, %s61_s22 }
  0x3e   :  { %p2471_p13 = scmp.ne.s32.totalorder %s61_s22, %s2470_s29  ;;  %p2476_p1 = scmp.lt.s32.totalorder %s2470_s29, %s2470_s29 }
  0x40   :  { %p2477_p2 = por %p2476_p1, %p2475_p0 }
  0x42   :  { %p2478_p3 = pnand %p2477_p2, %p2471_p13 }
  0x44   :  { %2481 = shalt.err (!%p2478_p3)
}
  0x45   :  { %66 = dma.hbm_to_vmem [thread:$0]  %s2965_s4, 4096, %s61_s22, [#allocation10], %s2563_s0, %s2563_s0, %s2564_s30  }
  0x46   :  { %2548 = dma.done.wait [#allocation4], 256  }
  0x47   :  { %2549 = vsyncadd [#allocation4], 4294967040 }
  0x48   :  { %2550 = dma.done.wait [#allocation7], 4128  }
  0x49   :  { %2551 = vsyncadd [#allocation7], 4294963168 }
  0x4a   :  { %2552 = dma.done.wait [#allocation10], 4096  }
  0x4b   :  { %2553 = vsyncadd [#allocation10], 4294963200  ;;  %v2566_v0 = vmov 0.0   ;;  %v84_v1 = vld [vmem:[#allocation8 + $0x8] sm:$0xff]  ;;  %v83_v3 = vld [vmem:[#allocation8] sm:$0xff]  ;;  %vm137_vm0 = vcmask 523264  }
  0x4c   :  { %208 = vmatprep.mubr.f32.mxu0 %v2566_v0  ;;  %285 = vmatprep.mubr.f32.mxu1 %v2566_v0  ;;  %v88_v2 = vld [vmem:[#allocation8 + $0x28] sm:$0xff]  ;;  %v87_v5 = vld [vmem:[#allocation8 + $0x20] sm:$0xff]  ;;  %v86_v15 = vld [vmem:[#allocation8 + $0x18] sm:$0xff]  ;;  %vm517_vm1 = vcmask 517120   ;;  %vm712_vm2 = vcmask 519170   ;;  %vm908_vm3 = vcmask 521220  }
  0x4d   :  { %v1965_v4 = vpack.c.bf16 %v88_v2, %v84_v1  ;;  %v92_v6 = vld [vmem:[#allocation8 + $0x48] sm:$0xff]  ;;  %v1967_v8 = vpack.c.bf16 %v87_v5, %v83_v3  ;;  %v91_v10 = vld [vmem:[#allocation8 + $0x40] sm:$0xff]  ;;  %v90_v16 = vld [vmem:[#allocation8 + $0x38] sm:$0xff]  ;;  %vm1104_vm4 = vcmask 523270   ;;  %s2568_s13 = smov [#allocation11]   ;;  %s2569_s15 = smov [#allocation14]  }
  0x4e   :  { %v96_v7 = vld [vmem:[#allocation8 + $0x68] sm:$0xff]  ;;  %v95_v11 = vld [vmem:[#allocation8 + $0x60] sm:$0xff]  ;;  %v85_v17 = vld [vmem:[#allocation8 + $0x10] sm:$0xff]  ;;  %v1981_v21 = vpack.c.bf16 %v90_v16, %v86_v15  ;;  %s1880_s14 = sshll.u32 %s2568_s13, 4  ;;  %s1903_s16 = sshll.u32 %s2569_s15, 4  ;;  %s2907_s14 = int_to_ptr.vmem [resolvable:$true] %s1880_s14  ;;  %s2911_s16 = int_to_ptr.vmem [resolvable:$true] %s1903_s16 }
  0x4f   :  { %v1969_v9 = vpack.c.bf16 %v96_v7, %v92_v6  ;;  %v100_v12 = vld [vmem:[#allocation8 + $0x88] sm:$0xff]  ;;  %1966 = vmatprep.subr.bf16.mxu0 %v1965_v4  ;;  %v1971_v14 = vpack.c.bf16 %v95_v11, %v91_v10  ;;  %v99_v19 = vld [vmem:[#allocation8 + $0x80] sm:$0xff]  ;;  %v89_v22 = vld [vmem:[#allocation8 + $0x30] sm:$0xff] }
  0x50   :  { %v104_v13 = vld [vmem:[#allocation8 + $0xa8] sm:$0xff]  ;;  %1968 = vmatpush1.bf16.msra.mxu0 %v1967_v8  ;;  %v103_v20 = vld [vmem:[#allocation8 + $0xa0] sm:$0xff]  ;;  %v1983_v23 = vpack.c.bf16 %v89_v22, %v85_v17  ;;  %v94_v26 = vld [vmem:[#allocation8 + $0x58] sm:$0xff]  ;;  %1982 = vmatprep.subr.bf16.mxu1 %v1981_v21 }
  0x51   :  { %1970 = vmatprep.subr.bf16.mxu0 %v1969_v9  ;;  %v1973_v18 = vpack.c.bf16 %v104_v13, %v100_v12  ;;  %v108_v24 = vld [vmem:[#allocation8 + $0xc8] sm:$0xff]  ;;  %v98_v27 = vld [vmem:[#allocation8 + $0x78] sm:$0xff]  ;;  %v93_v28 = vld [vmem:[#allocation8 + $0x50] sm:$0xff]  ;;  %v1975_v30 = vpack.c.bf16 %v103_v20, %v99_v19 }
  0x52   :  { %v112_v25 = vld [vmem:[#allocation8 + $0xe8] sm:$0xff]  ;;  %v97_v29 = vld [vmem:[#allocation8 + $0x70] sm:$0xff]  ;;  %1984 = vmatpush1.bf16.msra.mxu1 %v1983_v23  ;;  %v107_v31 = vld [vmem:[#allocation8 + $0xc0] sm:$0xff]  ;;  %v1985_v33 = vpack.c.bf16 %v98_v27, %v94_v26 }
  0x53   :  { %v111_v32 = vld [vmem:[#allocation8 + $0xe0] sm:$0xff]  ;;  %v1987_v34 = vpack.c.bf16 %v97_v29, %v93_v28  ;;  %v1977_v35 = vpack.c.bf16 %v112_v25, %v108_v24  ;;  %v307_v36 = vld [vmem:[#allocation9 + $0x8] sm:$0xff]  ;;  %v102_v37 = vld [vmem:[#allocation8 + $0x98] sm:$0xff] }
  0x54   :  { %1972 = vmatpush1.bf16.msra.mxu0 %v1971_v14  ;;  %v106_v38 = vld [vmem:[#allocation8 + $0xb8] sm:$0xff]  ;;  %1986 = vmatprep.subr.bf16.mxu1 %v1985_v33  ;;  %v311_v39 = vld [vmem:[#allocation9 + $0x28] sm:$0xff]  ;;  %v101_v41 = vld [vmem:[#allocation8 + $0x90] sm:$0xff]  ;;  %v1979_v44 = vpack.c.bf16 %v111_v32, %v107_v31 }
  0x55   :  { %1974 = vmatprep.subr.bf16.mxu0 %v1973_v18  ;;  %v1989_v40 = vpack.c.bf16 %v106_v38, %v102_v37  ;;  %v105_v42 = vld [vmem:[#allocation8 + $0xb0] sm:$0xff]  ;;  %v110_v43 = vld [vmem:[#allocation8 + $0xd8] sm:$0xff]  ;;  %v306_v45 = vld [vmem:[#allocation9] sm:$0xff]  ;;  %v2675_v48 = vpack.c.bf16 %v311_v39, %v307_v36  ;;  %v117_v37 = vlaneseq }
  0x56   :  { %1988 = vmatpush1.bf16.msra.mxu1 %v1987_v34  ;;  %v1991_v46 = vpack.c.bf16 %v105_v42, %v101_v41  ;;  %v114_v47 = vld [vmem:[#allocation8 + $0xf8] sm:$0xff]  ;;  %v310_v49 = vld [vmem:[#allocation9 + $0x20] sm:$0xff]  ;;  %v109_v51 = vld [vmem:[#allocation8 + $0xd0] sm:$0xff] }
  0x57   :  { %1990 = vmatprep.subr.bf16.mxu1 %v1989_v40  ;;  %v1993_v50 = vpack.c.bf16 %v114_v47, %v110_v43  ;;  %v113_v52 = vld [vmem:[#allocation8 + $0xf0] sm:$0xff]  ;;  %v315_v53 = vld [vmem:[#allocation9 + $0x48] sm:$0xff]  ;;  %v309_v55 = vld [vmem:[#allocation9 + $0x18] sm:$0xff]  ;;  %v2677_v58 = vpack.c.bf16 %v310_v49, %v306_v45  ;;  %v118_v38 = vshrl.u32 %v117_v37, 7 }
  0x58   :  { %1976 = vmatpush1.bf16.msra.mxu0 %v1975_v30  ;;  %v319_v54 = vld [vmem:[#allocation9 + $0x68] sm:$0xff]  ;;  %v313_v56 = vld [vmem:[#allocation9 + $0x38] sm:$0xff]  ;;  %v314_v59 = vld [vmem:[#allocation9 + $0x40] sm:$0xff]  ;;  %v1995_v61 = vpack.c.bf16 %v113_v52, %v109_v51 }
  0x59   :  { %1978 = vmatprep.subr.bf16.mxu0 %v1977_v35  ;;  %v81_v57 = vld [vmem:[#allocation3] sm:$0xff]  ;;  %v318_v60 = vld [vmem:[#allocation9 + $0x60] sm:$0xff]  ;;  %v2680_v62 = vpack.c.bf16 %v319_v54, %v315_v53  ;;  %v2682_v1 = vpack.c.bf16 %v313_v56, %v309_v55  ;;  %v317_v5 = vld [vmem:[#allocation9 + $0x58] sm:$0xff]  ;;  %v119_v39 = vsub.s32 0, %v118_v38  ;;  %v123_v41 = vsub.s32 1, %v118_v38 }
  0x5a   :  { %1992 = vmatpush1.bf16.msra.mxu1 %v1991_v46  ;;  %v323_v63 = vld [vmem:[#allocation9 + $0x88] sm:$0xff]  ;;  %v308_v2 = vld [vmem:[#allocation9 + $0x10] sm:$0xff]  ;;  %v321_v6 = vld [vmem:[#allocation9 + $0x78] sm:$0xff]  ;;  %v2686_v7 = vpack.c.bf16 %v318_v60, %v314_v59  ;;  %v127_v43 = vsub.s32 2, %v118_v38  ;;  %v131_v45 = vsub.s32 3, %v118_v38 }
  0x5b   :  { %1994 = vmatprep.subr.bf16.mxu1 %v1993_v50  ;;  %v312_v3 = vld [vmem:[#allocation9 + $0x30] sm:$0xff]  ;;  %v327_v4 = vld [vmem:[#allocation9 + $0xa8] sm:$0xff]  ;;  %v322_v8 = vld [vmem:[#allocation9 + $0x80] sm:$0xff]  ;;  %v2694_v14 = vpack.c.bf16 %v321_v6, %v317_v5 }
  0x5c   :  { %1980 = vmatpush1.bf16.msra.mxu0 %v1979_v44  ;;  %v326_v9 = vld [vmem:[#allocation9 + $0xa0] sm:$0xff]  ;;  %v2688_v10 = vpack.c.bf16 %v312_v3, %v308_v2  ;;  %v82_v11 = vld [vmem:[#allocation3 + $0x8] sm:$0xff]  ;;  %v2691_v12 = vpack.c.bf16 %v327_v4, %v323_v63  ;;  %v331_v13 = vld [vmem:[#allocation9 + $0xc8] sm:$0xff] }
  0x5d   :  { %1998 = vmatprep.subr.bf16.mxu0 %v2675_v48  ;;  %v316_v15 = vld [vmem:[#allocation9 + $0x50] sm:$0xff]  ;;  %v335_v17 = vld [vmem:[#allocation9 + $0xe8] sm:$0xff]  ;;  %v325_v18 = vld [vmem:[#allocation9 + $0x98] sm:$0xff]  ;;  %v2700_v20 = vpack.c.bf16 %v326_v9, %v322_v8 }
  0x5e   :  { %1996 = vmatpush1.bf16.msra.mxu1 %v1995_v61  ;;  %v320_v16 = vld [vmem:[#allocation9 + $0x70] sm:$0xff]  ;;  %v329_v19 = vld [vmem:[#allocation9 + $0xb8] sm:$0xff]  ;;  %v330_v21 = vld [vmem:[#allocation9 + $0xc0] sm:$0xff]  ;;  %v2706_v23 = vpack.c.bf16 %v335_v17, %v331_v13 }
  0x5f   :  { %1921 = vmatmul.mubr.msk.f32.vlgmr.msra.gmra.mrb[0].mxu0 %vm137_vm0, %v81_v57  ;;  %2014 = vmatprep.subr.bf16.mxu1 %v2682_v1  ;;  %v2703_v22 = vpack.c.bf16 %v320_v16, %v316_v15  ;;  %v334_v24 = vld [vmem:[#allocation9 + $0xe0] sm:$0xff]  ;;  %v2709_v25 = vpack.c.bf16 %v329_v19, %v325_v18  ;;  %v324_v26 = vld [vmem:[#allocation9 + $0x90] sm:$0xff]  ;;  %v333_v28 = vld [vmem:[#allocation9 + $0xd8] sm:$0xff] }
  0x60   :  { %2000 = vmatpush1.bf16.msra.mxu0 %v2677_v58  ;;  %214 = vmatprep.mubr.f32.mxu0 %v2566_v0  ;;  %v328_v27 = vld [vmem:[#allocation9 + $0xb0] sm:$0xff]  ;;  %v337_v29 = vld [vmem:[#allocation9 + $0xf8] sm:$0xff]  ;;  %v2715_v30 = vpack.c.bf16 %v334_v24, %v330_v21  ;;  %v338_v35 = vld [vmem:[%s2962_s1] sm:$0x3] }
  0x61   :  { %2002 = vmatprep.subr.bf16.mxu0 %v2680_v62  ;;  %1923 = vmatmul.mubr.msk.f32.vlgmr.msra.gmra.mrb[0].mxu1 %vm137_vm0, %v81_v57  ;;  %v2718_v31 = vpack.c.bf16 %v328_v27, %v324_v26  ;;  %v2722_v32 = vpack.c.bf16 %v337_v29, %v333_v28  ;;  %v332_v33 = vld [vmem:[#allocation9 + $0xd0] sm:$0xff]  ;;  %v339_v38 = vld [vmem:[#allocation6] sm:$0x3] }
  0x62   :  { %2016 = vmatpush1.bf16.msra.mxu1 %v2688_v10  ;;  %291 = vmatprep.mubr.f32.mxu1 %v2566_v0  ;;  %v336_v34 = vld [vmem:[#allocation9 + $0xf0] sm:$0xff] }
  0x63   :  { %1922 = vmatmul.mubr.msk.f32.gmra.mrb[2].mxu0 %vm137_vm0, %v82_v11  ;;  %2018 = vmatprep.subr.bf16.mxu1 %v2694_v14  ;;  %v2730_v36 = vpack.c.bf16 %v336_v34, %v332_v33  ;;  %v115_v40 = vld [vmem:[%s2966_s5] sm:$0xf]  ;;  %s2567_s5 = smov [#allocation12]  }
  0x64   :  { %2004 = vmatpush1.bf16.msra.mxu0 %v2686_v7  ;;  %411 = vmatprep.mubr.f32.mxu0 %v2566_v0  ;;  %v120_v42 = vrot.slane %v115_v40, %v119_v39  ;;  %v124_v44 = vrot.slane %v115_v40, %v123_v41  ;;  %v128_v50 = vrot.slane %v115_v40, %v127_v43  ;;  %s1893_s12 = sshll.u32 %s2567_s5, 4  ;;  %s1894_s12 = int_to_ptr.vmem [resolvable:$true] %s1893_s12 }
  0x65   :  { %2006 = vmatprep.subr.bf16.mxu0 %v2691_v12  ;;  %1924 = vmatmul.mubr.msk.f32.gmra.mrb[2].mxu1 %vm137_vm0, %v82_v11  ;;  %v132_v52 = vrot.slane %v115_v40, %v131_v45  ;;  %s2482_s17 = scalar_lea.vmem %s1894_s12, 32  ;;  %p2487_p5 = scmp.lt.s32.totalorder %s1894_s12, %s1894_s12 }
  0x66   :  { %2020 = vmatpush1.bf16.msra.mxu1 %v2703_v22  ;;  %482 = vmatprep.mubr.f32.mxu1 %v2566_v0  ;;  %p2483_p4 = scmp.ne.s32.totalorder %s1894_s12, %s2482_s17  ;;  %p2488_p6 = scmp.lt.s32.totalorder %s2482_s17, %s2482_s17 }
  0x67   :  { %2022 = vmatprep.subr.bf16.mxu1 %v2709_v25 }
  0x68   :  { %2008 = vmatpush1.bf16.msra.mxu0 %v2700_v20  ;;  %p2489_p7 = por %p2488_p6, %p2487_p5 }
  0x69   :  { %2010 = vmatprep.subr.bf16.mxu0 %v2706_v23 }
  0x6a   :  { %2024 = vmatpush1.bf16.msra.mxu1 %v2718_v31  ;;  %p2490_p8 = pnand %p2489_p7, %p2483_p4 }
  0x6b   :  { %2026 = vmatprep.subr.bf16.mxu1 %v2722_v32 }
  0x6c   :  { %2012 = vmatpush1.bf16.msra.mxu0 %v2715_v30 }
  0x6d   :  { %2030 = vmatprep.subr.bf16.mxu0 %v2675_v48 }
  0x6e   :  { %2028 = vmatpush1.bf16.msra.mxu1 %v2730_v36 }
  0x6f   :  { %1925 = vmatmul.mubr.msk.f32.vlgmr.msra.gmra.mrb[4].mxu0 %vm137_vm0, %v338_v35  ;;  %2046 = vmatprep.subr.bf16.mxu1 %v2682_v1 }
  0x70   :  { %2032 = vmatpush1.bf16.msra.mxu0 %v2677_v58  ;;  %590 = vmatprep.mubr.f32.mxu0 %v2566_v0 }
  0x71   :  { %2034 = vmatprep.subr.bf16.mxu0 %v2680_v62  ;;  %1926 = vmatmul.mubr.msk.f32.vlgmr.msra.gmra.mrb[4].mxu1 %vm137_vm0, %v338_v35 }
  0x72   :  { %2048 = vmatpush1.bf16.msra.mxu1 %v2688_v10  ;;  %661 = vmatprep.mubr.f32.mxu1 %v2566_v0 }
  0x73   :  { %2050 = vmatprep.subr.bf16.mxu1 %v2694_v14 }
  0x74   :  { %2036 = vmatpush1.bf16.msra.mxu0 %v2686_v7 }
  0x75   :  { %2038 = vmatprep.subr.bf16.mxu0 %v2691_v12 }
  0x76   :  { %2052 = vmatpush1.bf16.msra.mxu1 %v2703_v22 }
  0x77   :  { %2054 = vmatprep.subr.bf16.mxu1 %v2709_v25 }
  0x78   :  { %2040 = vmatpush1.bf16.msra.mxu0 %v2700_v20 }
  0x79   :  { %2042 = vmatprep.subr.bf16.mxu0 %v2706_v23 }
  0x7a   :  { %2056 = vmatpush1.bf16.msra.mxu1 %v2718_v31 }
  0x7b   :  { %2058 = vmatprep.subr.bf16.mxu1 %v2722_v32 }
  0x7c   :  { %2044 = vmatpush1.bf16.msra.mxu0 %v2715_v30 }
  0x7d   :  { %2062 = vmatprep.subr.bf16.mxu0 %v2675_v48 }
  0x7e   :  { %2060 = vmatpush1.bf16.msra.mxu1 %v2730_v36 }
  0x7f   :  { %2078 = vmatprep.subr.bf16.mxu1 %v2682_v1 }
 0x132   :  { %v210_v46 = vpop.f32.mrb[0].mxu0 }
 0x133   :  { %v211_v47 = vadd.f32 %v210_v46, %v120_v42  ;;  %v212_v49 = vpop.f32.mrb[1].mxu0 }
 0x134   :  { %v213_v51 = vadd.f32 %v212_v49, %v124_v44  ;;  %v287_v54 = vpop.f32.mrb[0].mxu1 }
 0x135   :  { %298 = vst [vmem:[#allocation2] sm:$0xff] %v211_v47  ;;  %v288_v57 = vadd.f32 %v287_v54, %v128_v50  ;;  %v289_v59 = vpop.f32.mrb[1].mxu1 }
 0x136   :  { %299 = vst [vmem:[#allocation2 + $0x8] sm:$0xff] %v213_v51  ;;  %v216_v53 = vpop.f32.mrb[2].mxu0  ;;  %v290_v61 = vadd.f32 %v289_v59, %v132_v52 }
 0x137   :  { %v217_v55 = vadd.f32 %v216_v53, %v120_v42  ;;  %v218_v56 = vpop.f32.mrb[3].mxu0  ;;  %300 = vst [vmem:[#allocation2 + $0x10] sm:$0xff] %v288_v57 }
 0x138   :  { %v219_v60 = vadd.f32 %v218_v56, %v124_v44  ;;  %301 = vst [vmem:[#allocation2 + $0x18] sm:$0xff] %v290_v61  ;;  %v293_v63 = vpop.f32.mrb[2].mxu1 }
 0x139   :  { %302 = vst [vmem:[#allocation2 + $0x20] sm:$0xff] %v217_v55  ;;  %v294_v2 = vadd.f32 %v293_v63, %v128_v50  ;;  %v295_v3 = vpop.f32.mrb[3].mxu1 }
 0x13a   :  { %303 = vst [vmem:[#allocation2 + $0x28] sm:$0xff] %v219_v60  ;;  %v296_v4 = vadd.f32 %v295_v3, %v132_v52 }
 0x13b   :  { %304 = vst [vmem:[#allocation2 + $0x30] sm:$0xff] %v294_v2 }
 0x13c   :  { %305 = vst [vmem:[#allocation2 + $0x38] sm:$0xff] %v296_v4  ;;  %v340_v5 = vld [vmem:[#allocation2] sm:$0x3]  ;;  %v519_v54 = vld [vmem:[#allocation2] sm:$0xc] }
 0x13d   :  { %v341_v9 = vld [vmem:[#allocation2 + $0x8] sm:$0x3]  ;;  %v520_v57 = vld [vmem:[#allocation2 + $0x8] sm:$0xc] }
 0x13e   :  { %v342_v18 = vld [vmem:[#allocation2 + $0x10] sm:$0x3]  ;;  %v521_v2 = vld [vmem:[#allocation2 + $0x10] sm:$0xc] }
 0x13f   :  { %v343_v24 = vld [vmem:[#allocation2 + $0x18] sm:$0x3] }
 0x142   :  { %v413_v6 = vpop.f32.mrb[4].mxu0 }
 0x143   :  { %v489_v8 = vadd.f32 %v413_v6, %v340_v5  ;;  %v415_v11 = vpop.f32.mrb[5].mxu0  ;;  %v522_v5 = vld [vmem:[#allocation2 + $0x18] sm:$0xc] }
 0x144   :  { %v490_v13 = vadd.f32 %v415_v11, %v341_v9  ;;  %v484_v17 = vpop.f32.mrb[4].mxu1 }
 0x145   :  { %v1927_v15 = vmul.f32 -1.442695, %v489_v8  ;;  %v486_v19 = vpop.f32.mrb[5].mxu1  ;;  %v491_v21 = vadd.f32 %v484_v17, %v342_v18 }
 0x146   :  { %v1928_v16 = vmul.f32 -1.442695, %v490_v13  ;;  %v492_v27 = vadd.f32 %v486_v19, %v343_v24 }
 0x147   :  { %2266 = vpow2.f32 %v1927_v15  ;;  %v1929_v26 = vmul.f32 -1.442695, %v491_v21 }
 0x148   :  { %2268 = vpow2.f32 %v1928_v16 }
 0x149   :  { %2270 = vpow2.f32 %v1929_v26 }
 0x14a   :  { %2272 = vtanh.f32 %v492_v27 }
 0x151   :  { %v2267_v28 = vpop.eup %2266 }
 0x152   :  { %v2269_v29 = vpop.eup %2268  ;;  %v502_v33 = vadd.f32 1.0, %v2267_v28 }
 0x153   :  { %v503_v34 = vadd.f32 1.0, %v2269_v29  ;;  %v2271_v35 = vpop.eup %2270 }
 0x154   :  { %2274 = vrcp.f32 %v502_v33  ;;  %v2273_v37 = vpop.eup %2272  ;;  %v504_v41 = vadd.f32 1.0, %v2271_v35 }
 0x155   :  { %2276 = vrcp.f32 %v503_v34 }
 0x156   :  { %2278 = vrcp.f32 %v504_v41 }
 0x15e   :  { %v2275_v39 = vpop.eup %2274 }
 0x15f   :  { %v2277_v40 = vpop.eup %2276  ;;  %v513_v42 = vmul.f32 %v2275_v39, %v2273_v37 }
 0x160   :  { %v512_v43 = vmul.f32 %v2277_v40, %v339_v38  ;;  %v2279_v45 = vpop.eup %2278 }
 0x162   :  { %v2759_v44 = vadd.f32 %v513_v42, %v512_v43  ;;  %v714_v42 = vld [vmem:[#allocation2] sm:$0x30] }
 0x164   :  { %2280 = vtanh.f32 %v2759_v44  ;;  %v704_v19 = vrot.slane %v2759_v44, 6 }
 0x16e   :  { %v2281_v46 = vpop.eup %2280 }
 0x16f   :  { %v516_v47 = vmul.f32 %v2281_v46, %v2279_v45  ;;  %v715_v45 = vld [vmem:[#allocation2 + $0x8] sm:$0x30] }
 0x171   :  { %518 = vst.msk [vmem:[#allocation11] sm:$0x3] %vm517_vm1, %v516_v47  ;;  %1930 = vmatmul.mubr.msk.f32.vlgmr.msra.gmra.mrb[6].mxu0 %vm137_vm0, %v516_v47  ;;  %1931 = vmatmul.mubr.msk.f32.vlgmr.msra.gmra.mrb[6].mxu1 %vm137_vm0, %v516_v47 }
 0x172   :  { %2064 = vmatpush1.bf16.msra.mxu0 %v2677_v58  ;;  %2080 = vmatpush1.bf16.msra.mxu1 %v2688_v10 }
 0x173   :  { %2066 = vmatprep.subr.bf16.mxu0 %v2680_v62  ;;  %2082 = vmatprep.subr.bf16.mxu1 %v2694_v14 }
 0x174   :  { %786 = vmatprep.mubr.f32.mxu0 %v2566_v0  ;;  %857 = vmatprep.mubr.f32.mxu1 %v2566_v0 }
 0x176   :  { %2068 = vmatpush1.bf16.msra.mxu0 %v2686_v7  ;;  %2084 = vmatpush1.bf16.msra.mxu1 %v2703_v22 }
 0x177   :  { %2070 = vmatprep.subr.bf16.mxu0 %v2691_v12  ;;  %2086 = vmatprep.subr.bf16.mxu1 %v2709_v25 }
 0x17a   :  { %2072 = vmatpush1.bf16.msra.mxu0 %v2700_v20  ;;  %2088 = vmatpush1.bf16.msra.mxu1 %v2718_v31 }
 0x17b   :  { %2074 = vmatprep.subr.bf16.mxu0 %v2706_v23  ;;  %2090 = vmatprep.subr.bf16.mxu1 %v2722_v32 }
 0x17e   :  { %2076 = vmatpush1.bf16.msra.mxu0 %v2715_v30  ;;  %2092 = vmatpush1.bf16.msra.mxu1 %v2730_v36 }
 0x17f   :  { %2094 = vmatprep.subr.bf16.mxu0 %v2675_v48  ;;  %2110 = vmatprep.subr.bf16.mxu1 %v2682_v1 }
 0x244   :  { %v592_v49 = vpop.f32.mrb[6].mxu0  ;;  %v663_v50 = vpop.f32.mrb[6].mxu1 }
 0x245   :  { %v672_v51 = vrot.slane %v592_v49, 6  ;;  %v594_v52 = vpop.f32.mrb[7].mxu0  ;;  %v665_v53 = vpop.f32.mrb[7].mxu1  ;;  %v674_v63 = vrot.slane %v663_v50, 6 }
 0x246   :  { %v673_v55 = vrot.slane %v594_v52, 6  ;;  %v675_v3 = vrot.slane %v665_v53, 6 }
 0x247   :  { %v680_v56 = vadd.f32 %v672_v51, %v519_v54  ;;  %v682_v4 = vadd.f32 %v674_v63, %v521_v2  ;;  %v716_v51 = vld [vmem:[#allocation2 + $0x10] sm:$0x30]  ;;  %v717_v54 = vld [vmem:[#allocation2 + $0x18] sm:$0x30] }
 0x248   :  { %v681_v59 = vadd.f32 %v673_v55, %v520_v57  ;;  %v683_v6 = vadd.f32 %v675_v3, %v522_v5 }
 0x249   :  { %v1932_v60 = vmul.f32 -1.442695, %v680_v56  ;;  %v1934_v8 = vmul.f32 -1.442695, %v682_v4 }
 0x24a   :  { %v1933_v61 = vmul.f32 -1.442695, %v681_v59 }
 0x24b   :  { %2282 = vpow2.f32 %v1932_v60 }
 0x24c   :  { %2284 = vpow2.f32 %v1933_v61 }
 0x24d   :  { %2286 = vtanh.f32 %v683_v6 }
 0x24e   :  { %2288 = vpow2.f32 %v1934_v8 }
 0x255   :  { %v2283_v9 = vpop.eup %2282 }
 0x256   :  { %v693_v11 = vadd.f32 1.0, %v2283_v9  ;;  %v2285_v13 = vpop.eup %2284 }
 0x257   :  { %v694_v15 = vadd.f32 1.0, %v2285_v13  ;;  %v2287_v16 = vpop.eup %2286 }
 0x258   :  { %2290 = vrcp.f32 %v693_v11  ;;  %v2289_v17 = vpop.eup %2288 }
 0x259   :  { %2292 = vrcp.f32 %v694_v15  ;;  %v695_v26 = vadd.f32 1.0, %v2289_v17 }
 0x25b   :  { %2294 = vrcp.f32 %v695_v26 }
 0x262   :  { %v2291_v18 = vpop.eup %2290 }
 0x263   :  { %v707_v21 = vmul.f32 %v2291_v18, %v2287_v16  ;;  %v2293_v24 = vpop.eup %2292 }
 0x264   :  { %v706_v27 = vmul.f32 %v2293_v24, %v704_v19 }
 0x265   :  { %v2295_v29 = vpop.eup %2294 }
 0x266   :  { %v2784_v28 = vadd.f32 %v707_v21, %v706_v27  ;;  %v910_v27 = vld [vmem:[#allocation2] sm:$0xc0] }
 0x268   :  { %2296 = vtanh.f32 %v2784_v28  ;;  %v900_v4 = vrot.slane %v2784_v28, 6 }
 0x272   :  { %v2297_v33 = vpop.eup %2296 }
 0x273   :  { %v710_v34 = vmul.f32 %v2297_v33, %v2295_v29  ;;  %v911_v33 = vld [vmem:[#allocation2 + $0x8] sm:$0xc0] }
 0x275   :  { %713 = vst.msk [vmem:[#allocation11] sm:$0xc] %vm712_vm2, %v710_v34  ;;  %v719_v35 = vrot.slane %v710_v34, 2 }
 0x277   :  { %1935 = vmatmul.mubr.msk.f32.vlgmr.msra.gmra.mrb[8].mxu0 %vm137_vm0, %v719_v35  ;;  %1936 = vmatmul.mubr.msk.f32.vlgmr.msra.gmra.mrb[8].mxu1 %vm137_vm0, %v719_v35 }
 0x278   :  { %2096 = vmatpush1.bf16.msra.mxu0 %v2677_v58  ;;  %2112 = vmatpush1.bf16.msra.mxu1 %v2688_v10 }
 0x279   :  { %2098 = vmatprep.subr.bf16.mxu0 %v2680_v62  ;;  %2114 = vmatprep.subr.bf16.mxu1 %v2694_v14 }
 0x27a   :  { %982 = vmatprep.mubr.f32.mxu0 %v2566_v0  ;;  %1053 = vmatprep.mubr.f32.mxu1 %v2566_v0 }
 0x27c   :  { %2100 = vmatpush1.bf16.msra.mxu0 %v2686_v7  ;;  %2116 = vmatpush1.bf16.msra.mxu1 %v2703_v22 }
 0x27d   :  { %2102 = vmatprep.subr.bf16.mxu0 %v2691_v12  ;;  %2118 = vmatprep.subr.bf16.mxu1 %v2709_v25 }
 0x280   :  { %2104 = vmatpush1.bf16.msra.mxu0 %v2700_v20  ;;  %2120 = vmatpush1.bf16.msra.mxu1 %v2718_v31 }
 0x281   :  { %2106 = vmatprep.subr.bf16.mxu0 %v2706_v23  ;;  %2122 = vmatprep.subr.bf16.mxu1 %v2722_v32 }
 0x284   :  { %2108 = vmatpush1.bf16.msra.mxu0 %v2715_v30  ;;  %2124 = vmatpush1.bf16.msra.mxu1 %v2730_v36 }
 0x285   :  { %2126 = vmatprep.subr.bf16.mxu0 %v2675_v48  ;;  %2142 = vmatprep.subr.bf16.mxu1 %v2682_v1 }
 0x34a   :  { %v788_v37 = vpop.f32.mrb[8].mxu0  ;;  %v859_v38 = vpop.f32.mrb[8].mxu1 }
 0x34b   :  { %v868_v39 = vrot.slane %v788_v37, 4  ;;  %v790_v40 = vpop.f32.mrb[9].mxu0  ;;  %v861_v41 = vpop.f32.mrb[9].mxu1  ;;  %v870_v50 = vrot.slane %v859_v38, 4 }
 0x34c   :  { %v869_v43 = vrot.slane %v790_v40, 4  ;;  %v871_v52 = vrot.slane %v861_v41, 4 }
 0x34d   :  { %v876_v44 = vadd.f32 %v868_v39, %v714_v42  ;;  %v878_v53 = vadd.f32 %v870_v50, %v716_v51  ;;  %v912_v39 = vld [vmem:[#allocation2 + $0x10] sm:$0xc0]  ;;  %v913_v42 = vld [vmem:[#allocation2 + $0x18] sm:$0xc0] }
 0x34e   :  { %v877_v46 = vadd.f32 %v869_v43, %v715_v45  ;;  %v879_v55 = vadd.f32 %v871_v52, %v717_v54 }
 0x34f   :  { %v1937_v47 = vmul.f32 -1.442695, %v876_v44  ;;  %v1939_v56 = vmul.f32 -1.442695, %v878_v53 }
 0x350   :  { %v1938_v49 = vmul.f32 -1.442695, %v877_v46 }
 0x351   :  { %2298 = vpow2.f32 %v1937_v47 }
 0x352   :  { %2300 = vpow2.f32 %v1938_v49 }
 0x353   :  { %2302 = vtanh.f32 %v879_v55 }
 0x354   :  { %2304 = vpow2.f32 %v1939_v56 }
 0x35b   :  { %v2299_v57 = vpop.eup %2298 }
 0x35c   :  { %v889_v59 = vadd.f32 1.0, %v2299_v57  ;;  %v2301_v60 = vpop.eup %2300 }
 0x35d   :  { %v890_v61 = vadd.f32 1.0, %v2301_v60  ;;  %v2303_v63 = vpop.eup %2302 }
 0x35e   :  { %2306 = vrcp.f32 %v889_v59  ;;  %v2305_v2 = vpop.eup %2304 }
 0x35f   :  { %2308 = vrcp.f32 %v890_v61  ;;  %v891_v8 = vadd.f32 1.0, %v2305_v2 }
 0x361   :  { %2310 = vrcp.f32 %v891_v8  ;;  %v1107_v8 = vld [vmem:[#allocation2 + $0x28] sm:$0x3] }
 0x368   :  { %v2307_v3 = vpop.eup %2306 }
 0x369   :  { %v903_v5 = vmul.f32 %v2307_v3, %v2303_v63  ;;  %v2309_v6 = vpop.eup %2308  ;;  %v1106_v3 = vld [vmem:[#allocation2 + $0x20] sm:$0x3] }
 0x36a   :  { %v902_v9 = vmul.f32 %v2309_v6, %v900_v4 }
 0x36b   :  { %v2311_v13 = vpop.eup %2310 }
 0x36c   :  { %v2809_v11 = vadd.f32 %v903_v5, %v902_v9 }
 0x36e   :  { %2312 = vtanh.f32 %v2809_v11  ;;  %v1096_v53 = vrot.slane %v2809_v11, 6 }
 0x378   :  { %v2313_v15 = vpop.eup %2312 }
 0x379   :  { %v906_v16 = vmul.f32 %v2313_v15, %v2311_v13 }
 0x37b   :  { %909 = vst.msk [vmem:[#allocation11] sm:$0x30] %vm908_vm3, %v906_v16  ;;  %v915_v17 = vrot.slane %v906_v16, 4 }
 0x37d   :  { %1940 = vmatmul.mubr.msk.f32.vlgmr.msra.gmra.mrb[10].mxu0 %vm137_vm0, %v915_v17  ;;  %1941 = vmatmul.mubr.msk.f32.vlgmr.msra.gmra.mrb[10].mxu1 %vm137_vm0, %v915_v17  ;;  %v1108_v17 = vld [vmem:[#allocation2 + $0x30] sm:$0x3] }
 0x37e   :  { %2128 = vmatpush1.bf16.msra.mxu0 %v2677_v58  ;;  %2144 = vmatpush1.bf16.msra.mxu1 %v2688_v10 }
 0x37f   :  { %2130 = vmatprep.subr.bf16.mxu0 %v2680_v62  ;;  %2146 = vmatprep.subr.bf16.mxu1 %v2694_v14 }
 0x380   :  { %1178 = vmatprep.mubr.f32.mxu0 %v2566_v0  ;;  %1249 = vmatprep.mubr.f32.mxu1 %v2566_v0 }
 0x382   :  { %2132 = vmatpush1.bf16.msra.mxu0 %v2686_v7  ;;  %2148 = vmatpush1.bf16.msra.mxu1 %v2703_v22 }
 0x383   :  { %2134 = vmatprep.subr.bf16.mxu0 %v2691_v12  ;;  %2150 = vmatprep.subr.bf16.mxu1 %v2709_v25 }
 0x386   :  { %2136 = vmatpush1.bf16.msra.mxu0 %v2700_v20  ;;  %2152 = vmatpush1.bf16.msra.mxu1 %v2718_v31 }
 0x387   :  { %2138 = vmatprep.subr.bf16.mxu0 %v2706_v23  ;;  %2154 = vmatprep.subr.bf16.mxu1 %v2722_v32 }
 0x38a   :  { %2140 = vmatpush1.bf16.msra.mxu0 %v2715_v30  ;;  %2156 = vmatpush1.bf16.msra.mxu1 %v2730_v36 }
 0x38b   :  { %2158 = vmatprep.subr.bf16.mxu0 %v2675_v48  ;;  %2174 = vmatprep.subr.bf16.mxu1 %v2682_v1 }
 0x450   :  { %v984_v18 = vpop.f32.mrb[10].mxu0  ;;  %v1055_v19 = vpop.f32.mrb[10].mxu1 }
 0x451   :  { %v1064_v21 = vrot.slane %v984_v18, 2  ;;  %v986_v24 = vpop.f32.mrb[11].mxu0  ;;  %v1057_v26 = vpop.f32.mrb[11].mxu1  ;;  %v1066_v38 = vrot.slane %v1055_v19, 2  ;;  %v1109_v19 = vld [vmem:[#allocation2 + $0x38] sm:$0x3] }
 0x452   :  { %v1065_v28 = vrot.slane %v986_v24, 2  ;;  %v1067_v40 = vrot.slane %v1057_v26, 2 }
 0x453   :  { %v1072_v29 = vadd.f32 %v1064_v21, %v910_v27  ;;  %v1074_v41 = vadd.f32 %v1066_v38, %v912_v39 }
 0x454   :  { %v1073_v34 = vadd.f32 %v1065_v28, %v911_v33  ;;  %v1075_v43 = vadd.f32 %v1067_v40, %v913_v42 }
 0x455   :  { %v1942_v35 = vmul.f32 -1.442695, %v1072_v29  ;;  %v1944_v44 = vmul.f32 -1.442695, %v1074_v41 }
 0x456   :  { %v1943_v37 = vmul.f32 -1.442695, %v1073_v34 }
 0x457   :  { %2314 = vpow2.f32 %v1942_v35 }
 0x458   :  { %2316 = vpow2.f32 %v1943_v37 }
 0x459   :  { %2318 = vtanh.f32 %v1075_v43 }
 0x45a   :  { %2320 = vpow2.f32 %v1944_v44 }
 0x461   :  { %v2315_v45 = vpop.eup %2314 }
 0x462   :  { %v1085_v46 = vadd.f32 1.0, %v2315_v45  ;;  %v2317_v47 = vpop.eup %2316 }
 0x463   :  { %v1086_v49 = vadd.f32 1.0, %v2317_v47  ;;  %v2319_v50 = vpop.eup %2318 }
 0x464   :  { %2322 = vrcp.f32 %v1085_v46  ;;  %v2321_v51 = vpop.eup %2320 }
 0x465   :  { %2324 = vrcp.f32 %v1086_v49  ;;  %v1087_v56 = vadd.f32 1.0, %v2321_v51 }
 0x467   :  { %2326 = vrcp.f32 %v1087_v56 }
 0x46e   :  { %v2323_v52 = vpop.eup %2322 }
 0x46f   :  { %v1099_v54 = vmul.f32 %v2323_v52, %v2319_v50  ;;  %v2325_v55 = vpop.eup %2324  ;;  %v1289_v52 = vld [vmem:[#allocation2 + $0x20] sm:$0xc] }
 0x470   :  { %v1098_v57 = vmul.f32 %v2325_v55, %v1096_v53  ;;  %v1290_v55 = vld [vmem:[#allocation2 + $0x28] sm:$0xc] }
 0x471   :  { %v2327_v60 = vpop.eup %2326 }
 0x472   :  { %v1100_v59 = vadd.f32 %v1099_v54, %v1098_v57 }
 0x474   :  { %2328 = vtanh.f32 %v1100_v59  ;;  %v1280_v37 = vrot.slane %v1100_v59, 6 }
 0x47e   :  { %v2329_v61 = vpop.eup %2328 }
 0x47f   :  { %v1102_v63 = vmul.f32 %v2329_v61, %v2327_v60  ;;  %v1291_v61 = vld [vmem:[#allocation2 + $0x30] sm:$0xc] }
 0x481   :  { %v1111_v2 = vrot.slane %v1102_v63, 6  ;;  %1105 = vst.msk [vmem:[#allocation11] sm:$0xc0] %vm1104_vm4, %v1102_v63 }
 0x483   :  { %1945 = vmatmul.mubr.msk.f32.vlgmr.msra.gmra.mrb[12].mxu0 %vm137_vm0, %v1111_v2  ;;  %1946 = vmatmul.mubr.msk.f32.vlgmr.msra.gmra.mrb[12].mxu1 %vm137_vm0, %v1111_v2  ;;  %v1292_v2 = vld [vmem:[#allocation2 + $0x38] sm:$0xc] }
 0x484   :  { %2160 = vmatpush1.bf16.msra.mxu0 %v2677_v58  ;;  %2176 = vmatpush1.bf16.msra.mxu1 %v2688_v10 }
 0x485   :  { %2162 = vmatprep.subr.bf16.mxu0 %v2680_v62  ;;  %2178 = vmatprep.subr.bf16.mxu1 %v2694_v14 }
 0x486   :  { %1360 = vmatprep.mubr.f32.mxu0 %v2566_v0  ;;  %1431 = vmatprep.mubr.f32.mxu1 %v2566_v0 }
 0x488   :  { %2164 = vmatpush1.bf16.msra.mxu0 %v2686_v7  ;;  %2180 = vmatpush1.bf16.msra.mxu1 %v2703_v22 }
 0x489   :  { %2166 = vmatprep.subr.bf16.mxu0 %v2691_v12  ;;  %2182 = vmatprep.subr.bf16.mxu1 %v2709_v25 }
 0x48c   :  { %2168 = vmatpush1.bf16.msra.mxu0 %v2700_v20  ;;  %2184 = vmatpush1.bf16.msra.mxu1 %v2718_v31 }
 0x48d   :  { %2170 = vmatprep.subr.bf16.mxu0 %v2706_v23  ;;  %2186 = vmatprep.subr.bf16.mxu1 %v2722_v32 }
 0x490   :  { %2172 = vmatpush1.bf16.msra.mxu0 %v2715_v30  ;;  %2188 = vmatpush1.bf16.msra.mxu1 %v2730_v36 }
 0x491   :  { %2190 = vmatprep.subr.bf16.mxu0 %v2675_v48  ;;  %2206 = vmatprep.subr.bf16.mxu1 %v2682_v1 }
 0x556   :  { %v1180_v4 = vpop.f32.mrb[12].mxu0  ;;  %v1251_v5 = vpop.f32.mrb[12].mxu1 }
 0x557   :  { %v1256_v6 = vadd.f32 %v1180_v4, %v1106_v3  ;;  %v1182_v9 = vpop.f32.mrb[13].mxu0  ;;  %v1253_v11 = vpop.f32.mrb[13].mxu1  ;;  %v1258_v18 = vadd.f32 %v1251_v5, %v1108_v17 }
 0x558   :  { %v1257_v13 = vadd.f32 %v1182_v9, %v1107_v8  ;;  %v1259_v21 = vadd.f32 %v1253_v11, %v1109_v19 }
 0x559   :  { %v1947_v15 = vmul.f32 -1.442695, %v1256_v6  ;;  %v1949_v24 = vmul.f32 -1.442695, %v1258_v18 }
 0x55a   :  { %v1948_v16 = vmul.f32 -1.442695, %v1257_v13 }
 0x55b   :  { %2330 = vpow2.f32 %v1947_v15 }
 0x55c   :  { %2332 = vpow2.f32 %v1948_v16 }
 0x55d   :  { %2334 = vtanh.f32 %v1259_v21 }
 0x55e   :  { %2336 = vpow2.f32 %v1949_v24 }
 0x565   :  { %v2331_v26 = vpop.eup %2330 }
 0x566   :  { %v1269_v27 = vadd.f32 1.0, %v2331_v26  ;;  %v2333_v28 = vpop.eup %2332 }
 0x567   :  { %v1270_v29 = vadd.f32 1.0, %v2333_v28  ;;  %v2335_v33 = vpop.eup %2334 }
 0x568   :  { %2338 = vrcp.f32 %v1269_v27  ;;  %v2337_v34 = vpop.eup %2336 }
 0x569   :  { %2340 = vrcp.f32 %v1270_v29  ;;  %v1271_v40 = vadd.f32 1.0, %v2337_v34  ;;  %v1486_v34 = vld [vmem:[#allocation2 + $0x38] sm:$0x30] }
 0x56b   :  { %2342 = vrcp.f32 %v1271_v40 }
 0x572   :  { %v2339_v35 = vpop.eup %2338 }
 0x573   :  { %v1283_v38 = vmul.f32 %v2339_v35, %v2335_v33  ;;  %v2341_v39 = vpop.eup %2340 }
 0x574   :  { %v1282_v41 = vmul.f32 %v2341_v39, %v1280_v37 }
 0x575   :  { %v2343_v43 = vpop.eup %2342 }
 0x576   :  { %v2855_v42 = vadd.f32 %v1283_v38, %v1282_v41 }
 0x578   :  { %2344 = vtanh.f32 %v2855_v42  ;;  %v1474_v15 = vrot.slane %v2855_v42, 6 }
 0x582   :  { %v2345_v44 = vpop.eup %2344 }
 0x583   :  { %v1286_v45 = vmul.f32 %v2345_v44, %v2343_v43 }
 0x585   :  { %1288 = vst.msk [vmem:[#allocation11 + $0x8] sm:$0x3] %vm517_vm1, %v1286_v45  ;;  %1950 = vmatmul.mubr.msk.f32.vlgmr.msra.gmra.mrb[14].mxu0 %vm137_vm0, %v1286_v45  ;;  %1951 = vmatmul.mubr.msk.f32.vlgmr.msra.gmra.mrb[14].mxu1 %vm137_vm0, %v1286_v45 }
 0x586   :  { %2192 = vmatpush1.bf16.msra.mxu0 %v2677_v58  ;;  %2208 = vmatpush1.bf16.msra.mxu1 %v2688_v10 }
 0x587   :  { %2194 = vmatprep.subr.bf16.mxu0 %v2680_v62  ;;  %2210 = vmatprep.subr.bf16.mxu1 %v2694_v14 }
 0x588   :  { %1555 = vmatprep.mubr.f32.mxu0 %v2566_v0  ;;  %1626 = vmatprep.mubr.f32.mxu1 %v2566_v0 }
 0x58a   :  { %2196 = vmatpush1.bf16.msra.mxu0 %v2686_v7  ;;  %2212 = vmatpush1.bf16.msra.mxu1 %v2703_v22 }
 0x58b   :  { %2198 = vmatprep.subr.bf16.mxu0 %v2691_v12  ;;  %2214 = vmatprep.subr.bf16.mxu1 %v2709_v25 }
 0x58e   :  { %2200 = vmatpush1.bf16.msra.mxu0 %v2700_v20  ;;  %2216 = vmatpush1.bf16.msra.mxu1 %v2718_v31 }
 0x58f   :  { %2202 = vmatprep.subr.bf16.mxu0 %v2706_v23  ;;  %2218 = vmatprep.subr.bf16.mxu1 %v2722_v32 }
 0x592   :  { %2204 = vmatpush1.bf16.msra.mxu0 %v2715_v30  ;;  %2220 = vmatpush1.bf16.msra.mxu1 %v2730_v36 }
 0x593   :  { %2222 = vmatprep.subr.bf16.mxu0 %v2675_v48  ;;  %2238 = vmatprep.subr.bf16.mxu1 %v2682_v1 }
 0x658   :  { %v1362_v46 = vpop.f32.mrb[14].mxu0  ;;  %v1433_v47 = vpop.f32.mrb[14].mxu1 }
 0x659   :  { %v1442_v49 = vrot.slane %v1362_v46, 6  ;;  %v1364_v50 = vpop.f32.mrb[15].mxu0  ;;  %v1435_v51 = vpop.f32.mrb[15].mxu1  ;;  %v1444_v60 = vrot.slane %v1433_v47, 6 }
 0x65a   :  { %v1443_v53 = vrot.slane %v1364_v50, 6  ;;  %v1445_v63 = vrot.slane %v1435_v51, 6 }
 0x65b   :  { %v1450_v54 = vadd.f32 %v1442_v49, %v1289_v52  ;;  %v1452_v48 = vadd.f32 %v1444_v60, %v1291_v61  ;;  %v1678_v61 = vld [vmem:[#allocation2 + $0x20] sm:$0xc0] }
 0x65c   :  { %v1451_v56 = vadd.f32 %v1443_v53, %v1290_v55  ;;  %v1453_v1 = vadd.f32 %v1445_v63, %v1292_v2  ;;  %v1679_v2 = vld [vmem:[#allocation2 + $0x28] sm:$0xc0] }
 0x65d   :  { %v1952_v57 = vmul.f32 -1.442695, %v1450_v54  ;;  %v1954_v3 = vmul.f32 -1.442695, %v1452_v48 }
 0x65e   :  { %v1953_v59 = vmul.f32 -1.442695, %v1451_v56 }
 0x65f   :  { %2346 = vpow2.f32 %v1952_v57 }
 0x660   :  { %2348 = vpow2.f32 %v1953_v59 }
 0x661   :  { %2350 = vtanh.f32 %v1453_v1 }
 0x662   :  { %2352 = vpow2.f32 %v1954_v3 }
 0x669   :  { %v2347_v4 = vpop.eup %2346 }
 0x66a   :  { %v1463_v5 = vadd.f32 1.0, %v2347_v4  ;;  %v2349_v6 = vpop.eup %2348 }
 0x66b   :  { %v1464_v8 = vadd.f32 1.0, %v2349_v6  ;;  %v2351_v9 = vpop.eup %2350  ;;  %v1680_v6 = vld [vmem:[#allocation2 + $0x30] sm:$0xc0] }
 0x66c   :  { %2354 = vrcp.f32 %v1463_v5  ;;  %v2353_v11 = vpop.eup %2352 }
 0x66d   :  { %2356 = vrcp.f32 %v1464_v8  ;;  %v1465_v18 = vadd.f32 1.0, %v2353_v11  ;;  %v1681_v11 = vld [vmem:[#allocation2 + $0x38] sm:$0xc0] }
 0x66f   :  { %2358 = vrcp.f32 %v1465_v18 }
 0x676   :  { %v2355_v13 = vpop.eup %2354 }
 0x677   :  { %v1477_v16 = vmul.f32 %v2355_v13, %v2351_v9  ;;  %v2357_v17 = vpop.eup %2356 }
 0x678   :  { %v1476_v19 = vmul.f32 %v2357_v17, %v1474_v15 }
 0x679   :  { %v2359_v24 = vpop.eup %2358 }
 0x67a   :  { %v2880_v21 = vadd.f32 %v1477_v16, %v1476_v19 }
 0x67c   :  { %2360 = vtanh.f32 %v2880_v21  ;;  %v1669_v44 = vrot.slane %v2880_v21, 6 }
 0x686   :  { %v2361_v26 = vpop.eup %2360 }
 0x687   :  { %v1480_v27 = vmul.f32 %v2361_v26, %v2359_v24 }
 0x689   :  { %1482 = vst.msk [vmem:[#allocation11 + $0x8] sm:$0xc] %vm712_vm2, %v1480_v27  ;;  %v1488_v28 = vrot.slane %v1480_v27, 2 }
 0x68b   :  { %1955 = vmatmul.mubr.msk.f32.vlgmr.msra.gmra.mrb[16].mxu0 %vm137_vm0, %v1488_v28  ;;  %1956 = vmatmul.mubr.msk.f32.vlgmr.msra.gmra.mrb[16].mxu1 %vm137_vm0, %v1488_v28 }
 0x68c   :  { %2224 = vmatpush1.bf16.msra.mxu0 %v2677_v58  ;;  %2240 = vmatpush1.bf16.msra.mxu1 %v2688_v10 }
 0x68d   :  { %2226 = vmatprep.subr.bf16.mxu0 %v2680_v62  ;;  %2242 = vmatprep.subr.bf16.mxu1 %v2694_v14 }
 0x68e   :  { %1750 = vmatprep.mubr.f32.mxu0 %v2566_v0  ;;  %1821 = vmatprep.mubr.f32.mxu1 %v2566_v0 }
 0x690   :  { %2228 = vmatpush1.bf16.msra.mxu0 %v2686_v7  ;;  %2244 = vmatpush1.bf16.msra.mxu1 %v2703_v22 }
 0x691   :  { %2230 = vmatprep.subr.bf16.mxu0 %v2691_v12  ;;  %2246 = vmatprep.subr.bf16.mxu1 %v2709_v25  ;;  %v1483_v12 = vld [vmem:[#allocation2 + $0x20] sm:$0x30]  ;;  %v1484_v25 = vld [vmem:[#allocation2 + $0x28] sm:$0x30] }
 0x694   :  { %2232 = vmatpush1.bf16.msra.mxu0 %v2700_v20  ;;  %2248 = vmatpush1.bf16.msra.mxu1 %v2718_v31 }
 0x695   :  { %2234 = vmatprep.subr.bf16.mxu0 %v2706_v23  ;;  %2250 = vmatprep.subr.bf16.mxu1 %v2722_v32  ;;  %v1485_v32 = vld [vmem:[#allocation2 + $0x30] sm:$0x30] }
 0x698   :  { %2236 = vmatpush1.bf16.msra.mxu0 %v2715_v30  ;;  %2252 = vmatpush1.bf16.msra.mxu1 %v2730_v36 }
 0x75e   :  { %v1557_v0 = vpop.f32.mrb[16].mxu0  ;;  %v1628_v58 = vpop.f32.mrb[16].mxu1 }
 0x75f   :  { %v1637_v62 = vrot.slane %v1557_v0, 4  ;;  %v1559_v7 = vpop.f32.mrb[17].mxu0  ;;  %v1630_v10 = vpop.f32.mrb[17].mxu1  ;;  %v1639_v23 = vrot.slane %v1628_v58, 4 }
 0x760   :  { %v1638_v14 = vrot.slane %v1559_v7, 4  ;;  %v1640_v33 = vrot.slane %v1630_v10, 4 }
 0x761   :  { %v1645_v22 = vadd.f32 %v1637_v62, %v1483_v12  ;;  %v1647_v30 = vadd.f32 %v1639_v23, %v1485_v32 }
 0x762   :  { %v1646_v20 = vadd.f32 %v1638_v14, %v1484_v25  ;;  %v1648_v36 = vadd.f32 %v1640_v33, %v1486_v34 }
 0x763   :  { %v1957_v29 = vmul.f32 -1.442695, %v1645_v22  ;;  %v1959_v35 = vmul.f32 -1.442695, %v1647_v30 }
 0x764   :  { %v1958_v31 = vmul.f32 -1.442695, %v1646_v20 }
 0x765   :  { %2362 = vpow2.f32 %v1957_v29 }
 0x766   :  { %2364 = vpow2.f32 %v1958_v31 }
 0x767   :  { %2366 = vtanh.f32 %v1648_v36 }
 0x768   :  { %2368 = vpow2.f32 %v1959_v35 }
 0x76f   :  { %v2363_v37 = vpop.eup %2362 }
 0x770   :  { %v1658_v38 = vadd.f32 1.0, %v2363_v37  ;;  %v2365_v39 = vpop.eup %2364 }
 0x771   :  { %v1659_v40 = vadd.f32 1.0, %v2365_v39  ;;  %v2367_v41 = vpop.eup %2366 }
 0x772   :  { %2370 = vrcp.f32 %v1658_v38  ;;  %v2369_v42 = vpop.eup %2368 }
 0x773   :  { %2372 = vrcp.f32 %v1659_v40  ;;  %v1660_v47 = vadd.f32 1.0, %v2369_v42 }
 0x775   :  { %2374 = vrcp.f32 %v1660_v47 }
 0x77c   :  { %v2371_v43 = vpop.eup %2370 }
 0x77d   :  { %v1672_v45 = vmul.f32 %v2371_v43, %v2367_v41  ;;  %v2373_v46 = vpop.eup %2372 }
 0x77e   :  { %v1671_v49 = vmul.f32 %v2373_v46, %v1669_v44 }
 0x77f   :  { %v2375_v51 = vpop.eup %2374 }
 0x780   :  { %v1673_v50 = vadd.f32 %v1672_v45, %v1671_v49 }
 0x782   :  { %2376 = vtanh.f32 %v1673_v50  ;;  %v1864_v27 = vrot.slane %v1673_v50, 6 }
 0x78c   :  { %v2377_v52 = vpop.eup %2376 }
 0x78d   :  { %v1675_v53 = vmul.f32 %v2377_v52, %v2375_v51 }
 0x78f   :  { %1677 = vst.msk [vmem:[#allocation11 + $0x8] sm:$0x30] %vm908_vm3, %v1675_v53  ;;  %v1683_v54 = vrot.slane %v1675_v53, 4 }
 0x791   :  { %1960 = vmatmul.mubr.msk.f32.vlgmr.msra.gmra.mrb[18].mxu0 %vm137_vm0, %v1683_v54  ;;  %1961 = vmatmul.mubr.msk.f32.vlgmr.msra.gmra.mrb[18].mxu1 %vm137_vm0, %v1683_v54 }
 0x864   :  { %v1752_v55 = vpop.f32.mrb[18].mxu0  ;;  %v1823_v56 = vpop.f32.mrb[18].mxu1 }
 0x865   :  { %v1832_v57 = vrot.slane %v1752_v55, 2  ;;  %v1754_v59 = vpop.f32.mrb[19].mxu0  ;;  %v1825_v60 = vpop.f32.mrb[19].mxu1  ;;  %v1834_v5 = vrot.slane %v1823_v56, 2 }
 0x866   :  { %v1833_v63 = vrot.slane %v1754_v59, 2  ;;  %v1835_v8 = vrot.slane %v1825_v60, 2 }
 0x867   :  { %v1840_v48 = vadd.f32 %v1832_v57, %v1678_v61  ;;  %v1842_v9 = vadd.f32 %v1834_v5, %v1680_v6 }
 0x868   :  { %v1841_v1 = vadd.f32 %v1833_v63, %v1679_v2  ;;  %v1843_v13 = vadd.f32 %v1835_v8, %v1681_v11 }
 0x869   :  { %v1962_v3 = vmul.f32 -1.442695, %v1840_v48  ;;  %v1964_v15 = vmul.f32 -1.442695, %v1842_v9 }
 0x86a   :  { %v1963_v4 = vmul.f32 -1.442695, %v1841_v1 }
 0x86b   :  { %2378 = vpow2.f32 %v1962_v3 }
 0x86c   :  { %2380 = vpow2.f32 %v1963_v4 }
 0x86d   :  { %2382 = vtanh.f32 %v1843_v13 }
 0x86e   :  { %2384 = vpow2.f32 %v1964_v15 }
 0x875   :  { %v2379_v16 = vpop.eup %2378 }
 0x876   :  { %v1853_v17 = vadd.f32 1.0, %v2379_v16  ;;  %v2381_v18 = vpop.eup %2380 }
 0x877   :  { %v1854_v19 = vadd.f32 1.0, %v2381_v18  ;;  %v2383_v21 = vpop.eup %2382 }
 0x878   :  { %2386 = vrcp.f32 %v1853_v17  ;;  %v2385_v24 = vpop.eup %2384 }
 0x879   :  { %2388 = vrcp.f32 %v1854_v19  ;;  %v1855_v58 = vadd.f32 1.0, %v2385_v24 }
 0x87b   :  { %2390 = vrcp.f32 %v1855_v58 }
 0x882   :  { %v2387_v26 = vpop.eup %2386 }
 0x883   :  { %v1867_v28 = vmul.f32 %v2387_v26, %v2383_v21  ;;  %v2389_v0 = vpop.eup %2388 }
 0x884   :  { %v1866_v62 = vmul.f32 %v2389_v0, %v1864_v27 }
 0x885   :  { %v2391_v10 = vpop.eup %2390 }
 0x886   :  { %v1868_v7 = vadd.f32 %v1867_v28, %v1866_v62 }
 0x888   :  { %2392 = vtanh.f32 %v1868_v7  ;;  %1874 = vst.msk [vmem:[#allocation14 - $0x6] sm:$0xc0] %vm1104_vm4, %v1868_v7 }
 0x892   :  { %v2393_v12 = vpop.eup %2392 }
 0x893   :  { %v1870_v14 = vmul.f32 %v2393_v12, %v2391_v10 }
 0x895   :  { %1872 = vst.msk [vmem:[#allocation11 + $0x8] sm:$0xc0] %vm1104_vm4, %v1870_v14  ;;  %1873 = vst.msk [vmem:[#allocation12 - $0x6] sm:$0xc0] %vm1104_vm4, %v1870_v14 }
 0x896   :  { %2493 = shalt.err (!%p2490_p8)
}
 0x897   :  { %s2494_s19 = scalar_lea.hbm %s2968_s7, 32 }
 0x898   :  { %p2495_p9 = scmp.ne.s32.totalorder %s2968_s7, %s2494_s19  ;;  %p2498_p10 = scmp.lt.u32.totalorder %s2494_s19, %s2968_s7 }
 0x89a   :  { %p2500_p11 = pnand %p2498_p10, %p2495_p9 }
 0x89c   :  { %2503 = shalt.err (!%p2500_p11)
}
 0x89d   :  { %1896 = dma.vmem_to_hbm [thread:$0]  %s1894_s12, 32, %s2968_s7, [#allocation13]  }
 0x89e   :  { %s2504_s26 = scalar_lea.vmem %s2907_s14, 256  ;;  %p2509_p13 = scmp.lt.s32.totalorder %s2907_s14, %s2907_s14 }
 0x89f   :  { %p2505_p12 = scmp.ne.s32.totalorder %s2907_s14, %s2504_s26  ;;  %p2510_p0 = scmp.lt.s32.totalorder %s2504_s26, %s2504_s26 }
 0x8a1   :  { %p2511_p1 = por %p2510_p0, %p2509_p13 }
 0x8a3   :  { %p2512_p2 = pnand %p2511_p1, %p2505_p12 }
 0x8a5   :  { %2515 = shalt.err (!%p2512_p2)
}
 0x8a6   :  { %s2516_s28 = scalar_lea.hbm %s2967_s6, 256 }
 0x8a7   :  { %p2517_p3 = scmp.ne.s32.totalorder %s2967_s6, %s2516_s28  ;;  %p2520_p4 = scmp.lt.u32.totalorder %s2516_s28, %s2967_s6 }
 0x8a9   :  { %p2522_p5 = pnand %p2520_p4, %p2517_p3 }
 0x8ab   :  { %2525 = shalt.err (!%p2522_p5)
}
 0x8ac   :  { %s2570_s7 = smov 2   ;;  %s2526_s11 = scalar_lea.vmem %s2911_s16, 32 }
 0x8ad   :  { %1886 = dma.vmem_to_hbm [thread:$0]  %s2907_s14, 256, %s2967_s6, [#allocation5], %s2564_s30, %s2564_s30, %s2570_s7  }
 0x8ae   :  { %p2527_p6 = scmp.ne.s32.totalorder %s2911_s16, %s2526_s11  ;;  %p2531_p7 = scmp.lt.s32.totalorder %s2911_s16, %s2911_s16 }
 0x8af   :  { %p2532_p8 = scmp.lt.s32.totalorder %s2526_s11, %s2526_s11 }
 0x8b1   :  { %p2533_p9 = por %p2532_p8, %p2531_p7 }
 0x8b3   :  { %p2534_p10 = pnand %p2533_p9, %p2527_p6 }
 0x8b5   :  { %2537 = shalt.err (!%p2534_p10)
}
 0x8b6   :  { %s2538_s13 = scalar_lea.hbm %s2969_s8, 32 }
 0x8b7   :  { %p2539_p11 = scmp.ne.s32.totalorder %s2969_s8, %s2538_s13  ;;  %p2542_p12 = scmp.lt.u32.totalorder %s2538_s13, %s2969_s8 }
 0x8b9   :  { %p2544_p13 = pnand %p2542_p12, %p2539_p11 }
 0x8bb   :  { %2547 = shalt.err (!%p2544_p13)
}
 0x8bc   :  { %1906 = dma.vmem_to_hbm [thread:$0]  %s2911_s16, 32, %s2969_s8, [#allocation13]  }
 0x8bd   :  { %2554 = dma.done.wait [#allocation5], 256  }
 0x8be   :  { %2555 = vsyncadd [#allocation5], 4294967040 }
 0x8bf   :  { %2556 = dma.done.wait [#allocation13], 64  }
 0x8c0   :  { %2557 = vsyncadd [#allocation13], 4294967232 }
 0x8c1   :  { %1916 = vsyncpa [#allocation4], 1 }
 0x8c2   :  { %1917 = vsyncpa [#allocation7], 1 }
 0x8c3   :  { %1918 = vsyncpa [#allocation10], 1 }
 0x8c4   :  { %1919 = vsyncpa [#allocation5], 1 }
 0x8c5   :  { %1920 = vsyncpa [#allocation13], 1 }

</bundles_post_ra>
